<compile_context>
chip_gen: v6e
topology: v6e:2x2x1
jax: 0.10.0
libtpu: 0.0.40
codegen_flags: <defaults>
</compile_context>

<pallas_src>
import functools

import jax
import jax.numpy as jnp
import numpy as np
from jax.experimental import pallas as pl
from jax.experimental.pallas import tpu as pltpu


def _round_up(a, b):
    return (a + b - 1) // b * b


def _vmem_capacity_bytes():
    try:
        return min(int(pltpu.get_tpu_info().vmem_capacity_bytes), 128 << 20)
    except Exception:
        return 64 << 20  # conservative fallback (v7x per-core VMEM)


def _pick_tm(S, Cin, Cout, block_m, vmem_bytes):
    """Spatial tile (lanes), derived from the VMEM budget when not given."""
    s_cap = _round_up(S, 128)
    if block_m is None:
        # Pass-2 per-spatial-column footprint (f32): double-buffered x block,
        # double-buffered att/out blocks, plus ~5 live (Cout, TM) temporaries.
        per_col = 4 * (2 * Cin + 4 * Cout + 5 * Cout)
        block_m = (vmem_bytes // 3) // max(per_col, 1)
        block_m = max(512, min(block_m, 16384))
    return max(128, min(_round_up(block_m, 128), s_cap))


# ---------------------------------------------------------------------------
# Pass 1: per-batch partial sum(x) and Gram matrix x @ x^T
# ---------------------------------------------------------------------------
def _stats_kernel(s_total, need_mask, x_ref, xsum_ref, gram_ref):
    # Accumulators are per-batch resident blocks (constant block index over t).
    @pl.when(pl.program_id(1) == 0)
    def _init():
        xsum_ref[...] = jnp.zeros_like(xsum_ref)
        gram_ref[...] = jnp.zeros_like(gram_ref)

    x = x_ref[...]                                               # (Cin, TM)
    if need_mask:
        # Zero out the tail columns of the (possibly partial) last tile.
        col = (pl.program_id(1) * x.shape[1]
               + jax.lax.broadcasted_iota(jnp.int32, x.shape, 1))
        x = jnp.where(col < s_total, x, 0.0)

    xsum_ref[...] += jnp.sum(x, axis=1, keepdims=True)           # (Cin, 1)
    # x @ x^T, contraction over the TM lanes (MXU-friendly depth).
    gram_ref[...] += jax.lax.dot_general(
        x, x, (((1,), (1,)), ((), ())), preferred_element_type=jnp.float32)


# ---------------------------------------------------------------------------
# Pass 2: fused  [conv(feats) ; conv(att)*BN]  + shift + LeakyReLU
#                + softmax(channels) + feats*att
# ---------------------------------------------------------------------------
def _fused_kernel(neg_slope, cout, split, x_ref, w_ref, shift_ref,
                  att_ref, out_ref):
    x = x_ref[...]                                               # (Cin, TM)
    # One MXU matmul for BOTH 1x1x1 convs (weights row-concatenated).
    y = jnp.dot(w_ref[...], x, preferred_element_type=jnp.float32)

    feats = y[:cout]                                             # (Cout, TM)
    a = y[split:split + cout] + shift_ref[...]                   # BN (scale folded into W)
    a = jnp.where(a > 0, a, neg_slope * a)                       # LeakyReLU(0.01)
    # TODO(synk): Dropout(p=0.1) is applied as identity (eval behavior);
    # training-mode stochastic masking is not reproduced here.

    # Softmax over channels (sublane axis): XLU reductions + EUP exp/recip.
    a = a - jnp.max(a, axis=0, keepdims=True)
    e = jnp.exp(a)
    s = jnp.sum(e, axis=0, keepdims=True)
    inv = pl.reciprocal(s, approx=True)
    inv = inv * (2.0 - s * inv)                                  # one Newton step -> f32 accuracy
    att = e * inv

    att_ref[...] = att.astype(att_ref.dtype)
    out_ref[...] = (feats * att).astype(out_ref.dtype)


# ---------------------------------------------------------------------------
# Wrapper
# ---------------------------------------------------------------------------
@functools.partial(
    jax.jit,
    static_argnames=("eps", "negative_slope", "block_m", "return_attention"))
def attention_module(x, w_feats, w_att, bn_gamma, bn_beta, *, eps=1e-5,
                     negative_slope=0.01, block_m=None, return_attention=True):
    """x: (N, Cin, D, H, W).  w_*: (Cout, Cin, 1, 1, 1).  Returns (att, out)."""
    N, Cin, D, H, W = x.shape
    Cout = w_feats.shape[0]
    S = D * H * W

    vmem_bytes = _vmem_capacity_bytes()
    tm = _pick_tm(S, Cin, Cout, block_m, vmem_bytes)
    n_t = pl.cdiv(S, tm)
    vmem_limit = int(vmem_bytes * 3 // 4)

    # Channel-first flattening of NCDHW is a pure (free) reshape, no transpose,
    # no padding copy.
    xr = x.reshape(N, Cin, S).astype(jnp.float32)

    # ---- pass 1: per-batch partial statistics of x (Gram form) --------------
    stats_kernel = functools.partial(_stats_kernel, S, (S % tm) != 0)
    xsum, gram = pl.pallas_call(
        stats_kernel,
        out_shape=(jax.ShapeDtypeStruct((N, Cin, 1), jnp.float32),
                   jax.ShapeDtypeStruct((N, Cin, Cin), jnp.float32)),
        grid=(N, n_t),
        in_specs=[pl.BlockSpec((None, Cin, tm), lambda n, t: (n, 0, t))],
        out_specs=(pl.BlockSpec((None, Cin, 1), lambda n, t: (n, 0, 0)),
                   pl.BlockSpec((None, Cin, Cin), lambda n, t: (n, 0, 0))),
        compiler_params=pltpu.CompilerParams(
            dimension_semantics=("parallel", "arbitrary"),
            vmem_limit_bytes=vmem_limit),
    )(xr)

    # ---- tiny glue: derive BN batch stats of the attention conv and fold
    #      gamma*rsqrt(var+eps) into the weights (BN collapses to a shift) ----
    hp = jax.lax.Precision.HIGHEST
    m = jnp.float32(N * S)
    sum_x = jnp.sum(xsum[:, :, 0], axis=0)                       # (Cin,)
    G = jnp.sum(gram, axis=0)                                    # (Cin, Cin)
    mean_x = sum_x / m
    cov_x = G / m - jnp.outer(mean_x, mean_x)                    # centered form

    wf = w_feats.reshape(Cout, Cin).astype(jnp.float32)
    wa = w_att.reshape(Cout, Cin).astype(jnp.float32)
    mean_y = jnp.einsum("oi,i->o", wa, mean_x, precision=hp)     # E[conv_att(x)]
    var_y = jnp.maximum(
        jnp.einsum("oi,ij,oj->o", wa, cov_x, wa, precision=hp), 0.0)  # biased batch var
    scale = bn_gamma.astype(jnp.float32) * jax.lax.rsqrt(var_y + eps)
    shift = (bn_beta.astype(jnp.float32) - mean_y * scale).reshape(Cout, 1)

    # Row-concatenated weight: rows [0:Cout] -> feats conv, rows
    # [split:split+Cout] -> BN-scaled attention conv (split keeps the second
    # block sublane-aligned so the in-kernel row slices are cheap).
    split = _round_up(Cout, 8)
    w_cat = (jnp.zeros((split + Cout, Cin), jnp.float32)
             .at[:Cout].set(wf)
             .at[split:].set(wa * scale[:, None]))

    # ---- pass 2: fused conv+conv + BN + LeakyReLU + softmax + multiply ------
    fused_kernel = functools.partial(_fused_kernel, float(negative_slope),
                                     Cout, split)
    att, out = pl.pallas_call(
        fused_kernel,
        out_shape=(jax.ShapeDtypeStruct((N, Cout, S), jnp.float32),
                   jax.ShapeDtypeStruct((N, Cout, S), jnp.float32)),
        grid=(N, n_t),
        in_specs=[
            pl.BlockSpec((None, Cin, tm), lambda n, t: (n, 0, t)),
            pl.BlockSpec((split + Cout, Cin), lambda n, t: (0, 0)),
            pl.BlockSpec((Cout, 1), lambda n, t: (0, 0)),
        ],
        out_specs=(pl.BlockSpec((None, Cout, tm), lambda n, t: (n, 0, t)),
                   pl.BlockSpec((None, Cout, tm), lambda n, t: (n, 0, t))),
        compiler_params=pltpu.CompilerParams(
            dimension_semantics=("parallel", "parallel"),
            vmem_limit_bytes=vmem_limit),
    )(xr, w_cat, shift)

    att = att.reshape(N, Cout, D, H, W)
    out = out.reshape(N, Cout, D, H, W)
    if return_attention:
        return att, out
    return out


# ---------------------------------------------------------------------------
# Pure-JAX reference (module semantics: train-mode BN, eval-mode dropout)
# ---------------------------------------------------------------------------
def attention_module_ref(x, w_feats, w_att, gamma, beta, eps=1e-5,
                         negative_slope=0.01):
    hp = jax.lax.Precision.HIGHEST
    wf = w_feats.reshape(w_feats.shape[0], w_feats.shape[1])
    wa = w_att.reshape(w_att.shape[0], w_att.shape[1])
    feats = jnp.einsum("oi,nidhw->nodhw", wf, x, precision=hp)
    a = jnp.einsum("oi,nidhw->nodhw", wa, x, precision=hp)
    # MaxPool3d(1, 1, 0) is the identity.
    mean = jnp.mean(a, axis=(0, 2, 3, 4), keepdims=True)
    var = jnp.mean(jnp.square(a - mean), axis=(0, 2, 3, 4), keepdims=True)
    a = (a - mean) * jax.lax.rsqrt(var + eps)
    a = a * gamma.reshape(1, -1, 1, 1, 1) + beta.reshape(1, -1, 1, 1, 1)
    a = jnp.where(a > 0, a, negative_slope * a)          # LeakyReLU
    att = jax.nn.softmax(a, axis=1)                      # F.softmax default dim=1 for 5-D
    out = feats * att
    return att, out


if __name__ == "__main__":
    key = jax.random.PRNGKey(0)
    k1, k2, k3, k4, k5 = jax.random.split(key, 5)

    # Small shapes consistent with the module.
    N, Cin, Cout, D, H, W = 2, 4, 8, 16, 16, 16
    x = jax.random.normal(k1, (N, Cin, D, H, W), jnp.float32)

    # Conv3d(Cin, Cout, 1, 1, 0, bias=False) weights, shape (Cout, Cin, 1, 1, 1).
    bound = 1.0 / (Cin ** 0.5)
    w_feats = jax.random.uniform(k2, (Cout, Cin, 1, 1, 1), jnp.float32, -bound, bound)
    w_att = jax.random.uniform(k3, (Cout, Cin, 1, 1, 1), jnp.float32, -bound, bound)
    gamma = 1.0 + 0.1 * jax.random.normal(k4, (Cout,), jnp.float32)
    beta = 0.1 * jax.random.normal(k5, (Cout,), jnp.float32)

    att_ref, out_ref = attention_module_ref(x, w_feats, w_att, gamma, beta)

    # Default (VMEM-derived) tile: single large lane-dense tile per batch.
    att, out = attention_module(x, w_feats, w_att, gamma, beta)
    att, out = jax.block_until_ready((att, out))
    assert att.shape == (N, Cout, D, H, W) and out.shape == (N, Cout, D, H, W)
    np.testing.assert_allclose(np.asarray(att), np.asarray(att_ref), atol=1e-3, rtol=1e-3)
    np.testing.assert_allclose(np.asarray(out), np.asarray(out_ref), atol=1e-3, rtol=1e-3)

    # Forced multi-tile grid with a partial tail tile: exercises the in-kernel
    # spatial masking (pass 1) and the partial-block output writeback (pass 2).
    att2, out2 = attention_module(x, w_feats, w_att, gamma, beta, block_m=1536)
    att2, out2 = jax.block_until_ready((att2, out2))
    np.testing.assert_allclose(np.asarray(att2), np.asarray(att_ref), atol=1e-3, rtol=1e-3)
    np.testing.assert_allclose(np.asarray(out2), np.asarray(out_ref), atol=1e-3, rtol=1e-3)

    print("KERNEL_OK")
</pallas_src>

<mosaic_0001>
module attributes {stable_mosaic.version = 11 : i64} {
  func.func @_stats_kernel(%arg0: i32, %arg1: i32, %arg2: memref<1x4x4096xf32, #tpu.memory_space<vmem>>, %arg3: memref<1x4x1xf32, #tpu.memory_space<vmem>>, %arg4: memref<1x4x4xf32, #tpu.memory_space<vmem>>) attributes {dimension_semantics = [#tpu.dimension_semantics<parallel>, #tpu.dimension_semantics<arbitrary>], iteration_bounds = array<i64: 2, 1>, scalar_prefetch = 0 : i64, scratch_operands = 0 : i64, tpu.core_type = #tpu.core_type<tc>, window_params = [{transform_indices = @transform_0, window_bounds = array<i64: 1, 4, 4096>}, {transform_indices = @transform_1, window_bounds = array<i64: 1, 4, 1>}, {transform_indices = @transform_2, window_bounds = array<i64: 1, 4, 4>}]} {
    %c0_i32 = arith.constant 0 : i32
    %0 = arith.cmpi eq, %arg1, %c0_i32 : i32
    %1 = arith.extui %0 : i1 to i32
    %c0_i32_0 = arith.constant 0 : i32
    %2 = arith.cmpi ne, %1, %c0_i32_0 : i32
    scf.if %2 {
      %cst_16 = arith.constant 0.000000e+00 : f32
      %20 = vector.broadcast %cst_16 : f32 to vector<4x1xf32>
      %c0_17 = arith.constant 0 : index
      %c0_18 = arith.constant 0 : index
      %c0_19 = arith.constant 0 : index
      %21 = vector.load %arg3[%c0_17, %c0_18, %c0_19] : memref<1x4x1xf32, #tpu.memory_space<vmem>>, vector<1x4x1xf32>
      %22 = vector.shape_cast %21 : vector<1x4x1xf32> to vector<4x1xf32>
      %23 = vector.shape_cast %20 : vector<4x1xf32> to vector<1x4x1xf32>
      tpu.vector_store %arg3[%c0_17, %c0_18, %c0_19], %23 {strides = array<i32>} : memref<1x4x1xf32, #tpu.memory_space<vmem>>, vector<1x4x1xf32>,
      %cst_20 = arith.constant 0.000000e+00 : f32
      %24 = vector.broadcast %cst_20 : f32 to vector<4x4xf32>
      %c0_21 = arith.constant 0 : index
      %c0_22 = arith.constant 0 : index
      %c0_23 = arith.constant 0 : index
      %25 = vector.load %arg4[%c0_21, %c0_22, %c0_23] : memref<1x4x4xf32, #tpu.memory_space<vmem>>, vector<1x4x4xf32>
      %26 = vector.shape_cast %25 : vector<1x4x4xf32> to vector<4x4xf32>
      %27 = vector.shape_cast %24 : vector<4x4xf32> to vector<1x4x4xf32>
      tpu.vector_store %arg4[%c0_21, %c0_22, %c0_23], %27 {strides = array<i32>} : memref<1x4x4xf32, #tpu.memory_space<vmem>>, vector<1x4x4xf32>,
    } else {
    }
    %c0 = arith.constant 0 : index
    %c0_1 = arith.constant 0 : index
    %c0_2 = arith.constant 0 : index
    %3 = vector.load %arg2[%c0, %c0_1, %c0_2] : memref<1x4x4096xf32, #tpu.memory_space<vmem>>, vector<1x4x4096xf32>
    %4 = vector.shape_cast %3 : vector<1x4x4096xf32> to vector<4x4096xf32>
    %c0_3 = arith.constant 0 : index
    %c0_4 = arith.constant 0 : index
    %c0_5 = arith.constant 0 : index
    %5 = vector.load %arg3[%c0_3, %c0_4, %c0_5] : memref<1x4x1xf32, #tpu.memory_space<vmem>>, vector<1x4x1xf32>
    %6 = vector.shape_cast %5 : vector<1x4x1xf32> to vector<4x1xf32>
    %cst = arith.constant dense<0.000000e+00> : vector<4xf32>
    %7 = vector.multi_reduction <add>, %4, %cst [1] : vector<4x4096xf32> to vector<4xf32>
    %8 = vector.shape_cast %7 : vector<4xf32> to vector<4x1xf32>
    %9 = arith.addf %6, %8 : vector<4x1xf32>
    %c0_6 = arith.constant 0 : index
    %c0_7 = arith.constant 0 : index
    %c0_8 = arith.constant 0 : index
    %10 = vector.load %arg3[%c0_6, %c0_7, %c0_8] : memref<1x4x1xf32, #tpu.memory_space<vmem>>, vector<1x4x1xf32>
    %11 = vector.shape_cast %10 : vector<1x4x1xf32> to vector<4x1xf32>
    %12 = vector.shape_cast %9 : vector<4x1xf32> to vector<1x4x1xf32>
    tpu.vector_store %arg3[%c0_6, %c0_7, %c0_8], %12 {strides = array<i32>} : memref<1x4x1xf32, #tpu.memory_space<vmem>>, vector<1x4x1xf32>,
    %c0_9 = arith.constant 0 : index
    %c0_10 = arith.constant 0 : index
    %c0_11 = arith.constant 0 : index
    %13 = vector.load %arg4[%c0_9, %c0_10, %c0_11] : memref<1x4x4xf32, #tpu.memory_space<vmem>>, vector<1x4x4xf32>
    %14 = vector.shape_cast %13 : vector<1x4x4xf32> to vector<4x4xf32>
    %cst_12 = arith.constant dense<0.000000e+00> : vector<4x4xf32>
    %15 = tpu.matmul %4, %4, %cst_12 {dimension_numbers = #tpu.dot_dimension_numbers<[1], [1], [0], [0], [0, 0, 1, 0], [], []>} : vector<4x4096xf32>, vector<4x4096xf32>, vector<4x4xf32> -> vector<4x4xf32>
    %16 = arith.addf %14, %15 : vector<4x4xf32>
    %c0_13 = arith.constant 0 : index
    %c0_14 = arith.constant 0 : index
    %c0_15 = arith.constant 0 : index
    %17 = vector.load %arg4[%c0_13, %c0_14, %c0_15] : memref<1x4x4xf32, #tpu.memory_space<vmem>>, vector<1x4x4xf32>
    %18 = vector.shape_cast %17 : vector<1x4x4xf32> to vector<4x4xf32>
    %19 = vector.shape_cast %16 : vector<4x4xf32> to vector<1x4x4xf32>
    tpu.vector_store %arg4[%c0_13, %c0_14, %c0_15], %19 {strides = array<i32>} : memref<1x4x4xf32, #tpu.memory_space<vmem>>, vector<1x4x4xf32>,
    return
  }
  func.func @transform_0(%arg0: i32, %arg1: i32) -> (i32, i32, i32) {
    %c0_i32 = arith.constant 0 : i32
    %c0_i32_0 = arith.constant 0 : i32
    return %arg0, %c0_i32, %arg1 : i32, i32, i32
  }
  func.func @transform_1(%arg0: i32, %arg1: i32) -> (i32, i32, i32) {
    %c0_i32 = arith.constant 0 : i32
    %c0_i32_0 = arith.constant 0 : i32
    %c0_i32_1 = arith.constant 0 : i32
    return %arg0, %c0_i32, %c0_i32_0 : i32, i32, i32
  }
  func.func @transform_2(%arg0: i32, %arg1: i32) -> (i32, i32, i32) {
    %c0_i32 = arith.constant 0 : i32
    %c0_i32_0 = arith.constant 0 : i32
    %c0_i32_1 = arith.constant 0 : i32
    return %arg0, %c0_i32, %c0_i32_0 : i32, i32, i32
  }
}

module attributes {stable_mosaic.version = 11 : i64} {
  func.func @_fused_kernel(%arg0: i32, %arg1: i32, %arg2: memref<1x4x4096xf32, #tpu.memory_space<vmem>>, %arg3: memref<16x4xf32, #tpu.memory_space<vmem>>, %arg4: memref<8x1xf32, #tpu.memory_space<vmem>>, %arg5: memref<1x8x4096xf32, #tpu.memory_space<vmem>>, %arg6: memref<1x8x4096xf32, #tpu.memory_space<vmem>>) attributes {dimension_semantics = [#tpu.dimension_semantics<parallel>, #tpu.dimension_semantics<parallel>], iteration_bounds = array<i64: 2, 1>, scalar_prefetch = 0 : i64, scratch_operands = 0 : i64, tpu.core_type = #tpu.core_type<tc>, window_params = [{transform_indices = @transform_0, window_bounds = array<i64: 1, 4, 4096>}, {pipeline_mode = #tpu.pipeline_mode<synchronous>, transform_indices = @transform_1, window_bounds = array<i64: 16, 4>}, {pipeline_mode = #tpu.pipeline_mode<synchronous>, transform_indices = @transform_2, window_bounds = array<i64: 8, 1>}, {transform_indices = @transform_3, window_bounds = array<i64: 1, 8, 4096>}, {transform_indices = @transform_4, window_bounds = array<i64: 1, 8, 4096>}]} {
    %c0 = arith.constant 0 : index
    %c0_0 = arith.constant 0 : index
    %c0_1 = arith.constant 0 : index
    %0 = vector.load %arg2[%c0, %c0_0, %c0_1] : memref<1x4x4096xf32, #tpu.memory_space<vmem>>, vector<1x4x4096xf32>
    %1 = vector.shape_cast %0 : vector<1x4x4096xf32> to vector<4x4096xf32>
    %c0_2 = arith.constant 0 : index
    %c0_3 = arith.constant 0 : index
    %2 = vector.load %arg3[%c0_2, %c0_3] : memref<16x4xf32, #tpu.memory_space<vmem>>, vector<16x4xf32>
    %cst = arith.constant dense<0.000000e+00> : vector<16x4096xf32>
    %3 = tpu.matmul %2, %1, %cst {dimension_numbers = #tpu.dot_dimension_numbers<[1], [0], [0], [1], [0, 0, 1, 1], [], []>} : vector<16x4xf32>, vector<4x4096xf32>, vector<16x4096xf32> -> vector<16x4096xf32>
    %4 = vector.extract_strided_slice %3 {offsets = [0, 0], sizes = [8, 4096], strides = [1, 1]} : vector<16x4096xf32> to vector<8x4096xf32>
    %5 = vector.extract_strided_slice %3 {offsets = [8, 0], sizes = [8, 4096], strides = [1, 1]} : vector<16x4096xf32> to vector<8x4096xf32>
    %c0_4 = arith.constant 0 : index
    %c0_5 = arith.constant 0 : index
    %6 = vector.load %arg4[%c0_4, %c0_5] : memref<8x1xf32, #tpu.memory_space<vmem>>, vector<8x1xf32>
    %7 = vector.broadcast %6 : vector<8x1xf32> to vector<8x4096xf32>
    %8 = arith.addf %5, %7 : vector<8x4096xf32>
    %cst_6 = arith.constant 0.000000e+00 : f32
    %9 = vector.broadcast %cst_6 : f32 to vector<8x4096xf32>
    %10 = arith.cmpf ogt, %8, %9 : vector<8x4096xf32>
    %cst_7 = arith.constant 0.00999999977 : f32
    %11 = vector.broadcast %cst_7 : f32 to vector<8x4096xf32>
    %12 = arith.mulf %11, %8 : vector<8x4096xf32>
    %13 = arith.select %10, %8, %12 : vector<8x4096xi1>, vector<8x4096xf32>
    %cst_8 = arith.constant dense<0xFF800000> : vector<4096xf32>
    %14 = vector.multi_reduction <maximumf>, %13, %cst_8 [0] : vector<8x4096xf32> to vector<4096xf32>
    %15 = vector.shape_cast %14 : vector<4096xf32> to vector<1x4096xf32>
    %16 = vector.broadcast %15 : vector<1x4096xf32> to vector<8x4096xf32>
    %17 = arith.subf %13, %16 : vector<8x4096xf32>
    %18 = math.exp %17 : vector<8x4096xf32>
    %cst_9 = arith.constant dense<0.000000e+00> : vector<4096xf32>
    %19 = vector.multi_reduction <add>, %18, %cst_9 [0] : vector<8x4096xf32> to vector<4096xf32>
    %20 = vector.shape_cast %19 : vector<4096xf32> to vector<1x4096xf32>
    %21 = tpu.reciprocal %20 {approx = true} : vector<1x4096xf32> -> vector<1x4096xf32>
    %22 = arith.mulf %20, %21 : vector<1x4096xf32>
    %cst_10 = arith.constant 2.000000e+00 : f32
    %23 = vector.broadcast %cst_10 : f32 to vector<1x4096xf32>
    %24 = arith.subf %23, %22 : vector<1x4096xf32>
    %25 = arith.mulf %21, %24 : vector<1x4096xf32>
    %26 = vector.broadcast %25 : vector<1x4096xf32> to vector<8x4096xf32>
    %27 = arith.mulf %18, %26 : vector<8x4096xf32>
    %c0_11 = arith.constant 0 : index
    %c0_12 = arith.constant 0 : index
    %c0_13 = arith.constant 0 : index
    %28 = vector.load %arg5[%c0_11, %c0_12, %c0_13] : memref<1x8x4096xf32, #tpu.memory_space<vmem>>, vector<1x8x4096xf32>
    %29 = vector.shape_cast %28 : vector<1x8x4096xf32> to vector<8x4096xf32>
    %30 = vector.shape_cast %27 : vector<8x4096xf32> to vector<1x8x4096xf32>
    tpu.vector_store %arg5[%c0_11, %c0_12, %c0_13], %30 {strides = array<i32>} : memref<1x8x4096xf32, #tpu.memory_space<vmem>>, vector<1x8x4096xf32>,
    %31 = arith.mulf %4, %27 : vector<8x4096xf32>
    %c0_14 = arith.constant 0 : index
    %c0_15 = arith.constant 0 : index
    %c0_16 = arith.constant 0 : index
    %32 = vector.load %arg6[%c0_14, %c0_15, %c0_16] : memref<1x8x4096xf32, #tpu.memory_space<vmem>>, vector<1x8x4096xf32>
    %33 = vector.shape_cast %32 : vector<1x8x4096xf32> to vector<8x4096xf32>
    %34 = vector.shape_cast %31 : vector<8x4096xf32> to vector<1x8x4096xf32>
    tpu.vector_store %arg6[%c0_14, %c0_15, %c0_16], %34 {strides = array<i32>} : memref<1x8x4096xf32, #tpu.memory_space<vmem>>, vector<1x8x4096xf32>,
    return
  }
  func.func @transform_0(%arg0: i32, %arg1: i32) -> (i32, i32, i32) {
    %c0_i32 = arith.constant 0 : i32
    %c0_i32_0 = arith.constant 0 : i32
    return %arg0, %c0_i32, %arg1 : i32, i32, i32
  }
  func.func @transform_1(%arg0: i32, %arg1: i32) -> (i32, i32) {
    %c0_i32 = arith.constant 0 : i32
    %c0_i32_0 = arith.constant 0 : i32
    %c0_i32_1 = arith.constant 0 : i32
    return %c0_i32, %c0_i32_0 : i32, i32
  }
  func.func @transform_2(%arg0: i32, %arg1: i32) -> (i32, i32) {
    %c0_i32 = arith.constant 0 : i32
    %c0_i32_0 = arith.constant 0 : i32
    %c0_i32_1 = arith.constant 0 : i32
    return %c0_i32, %c0_i32_0 : i32, i32
  }
  func.func @transform_3(%arg0: i32, %arg1: i32) -> (i32, i32, i32) {
    %c0_i32 = arith.constant 0 : i32
    %c0_i32_0 = arith.constant 0 : i32
    return %arg0, %c0_i32, %arg1 : i32, i32, i32
  }
  func.func @transform_4(%arg0: i32, %arg1: i32) -> (i32, i32, i32) {
    %c0_i32 = arith.constant 0 : i32
    %c0_i32_0 = arith.constant 0 : i32
    return %arg0, %c0_i32, %arg1 : i32, i32, i32
  }
}

</mosaic_0001>

<bundles_post_ra>
// kernel: attention_module.2
= control target key start
LH: loop header
LB: loop body
LE: loop exit
PB: predicated region body
PF: predicated region fallthrough
CT: control target
= control target key end

     0   :  { %s1638_s9 = smov 0   ;;  %s1640_s10 = smov 0   ;;  %s1811_s0 = inlined_call_operand.vmem [shape: f32[2,4,4096], index: 0, kind: input, shape index: {}]   ;;  %s1812_s1 = inlined_call_operand.vmem [shape: f32[2,4,1], index: 1, kind: output, shape index: {0}]   ;;  %s1813_s2 = inlined_call_operand.vmem [shape: f32[2,4,4], index: 2, kind: output, shape index: {1}]  }
   0x1   :  { %s1642_s11 = smov 0  }
   0x2 LB: > { %s25_s12 = sadd.s32 1, %s1616_s10  ;;  %p1549_p0 = scmp.ge.s32.totalorder %s1620_s11, 1  ;;  %s1620_s11 = sphi %s1642_s11, %s13_s11   ;;  %s1616_s10 = sphi %s1640_s10, %s1815_s10   ;;  %s1612_s9 = sphi %s1638_s9, %s1814_s9  }
   0x3   : > { %p27_p1 = scmp.ge.s32.totalorder %s25_s12, 2  ;;  %p134_p2 = scmp.lt.s32.totalorder %s1620_s11, 3 }
   0x5   : > { %s1817_s12 = smov (%p27_p1, %s25_s12), 0  ;;  %p135_p3 = pnand %p1549_p0, %p134_p2 }
   0x6   : > { %p164_p4 = scmp.lt.s32.totalorder (!%p135_p3), %s1612_s9, 1 }
   0x7   : > { %138 = sbr.rel (%p135_p3) target bundleno = 250 (0xfa), region = 24 }
   0xc   : > { %s1819_s9 = smov (!%p164_p4, %s1612_s9), 1  ;;  %vm254_vm0 = vcmask 1043456   ;;  %vm187_vm1 = vcmask 27648   ;;  %vm185_vm2 = vcmask 3072  }
   0xd   : > { %s1556_s13 = sshll.u32 %s1819_s9, 7  ;;  %s1552_s17 = sshll.u32 %s1819_s9, 2 }
   0xe   : > { %s1662_s16 = scalar_lea.vmem %s1811_s0, %s1556_s13  ;;  %s1790_s20 = scalar_lea.vmem %s1813_s2, %s1552_s17 }
   0xf   : > { %v189_v0 = vld [vmem:[%s1662_s16] sm:$0xff]  ;;  %v190_v1 = vld [vmem:[%s1662_s16 + $0x8] sm:$0xff]  ;;  %v191_v2 = vld [vmem:[%s1662_s16 + $0x10] sm:$0xff]  ;;  %s176_s23 = scalar_lea.vmem %s1812_s1, %s1552_s17 }
  0x10   : > { %v222_v3 = vcombine.high %v189_v0, %v189_v0  ;;  %v255_v4 = vsel %vm254_vm0, %v189_v0, 0.0  ;;  %v223_v5 = vcombine.high %v190_v1, %v190_v1  ;;  %v192_v6 = vld [vmem:[%s1662_s16 + $0x18] sm:$0xff]  ;;  %v224_v7 = vcombine.high %v191_v2, %v191_v2  ;;  %v193_v11 = vld [vmem:[%s1662_s16 + $0x20] sm:$0xff]  ;;  %v194_v12 = vld [vmem:[%s1662_s16 + $0x28] sm:$0xff] }
  0x11   : > { %v225_v8 = vcombine.high %v192_v6, %v192_v6  ;;  %v258_v10 = vsel %vm254_vm0, %v190_v1, 0.0  ;;  %v226_v16 = vcombine.high %v193_v11, %v193_v11  ;;  %v227_v17 = vcombine.high %v194_v12, %v194_v12  ;;  %v195_v19 = vld [vmem:[%s1662_s16 + $0x30] sm:$0xff]  ;;  %v1677_v20 = vld [vmem:[%s1662_s16 + $0x38] sm:$0xff]  ;;  %v1686_v27 = vld [vmem:[%s1662_s16 + $0x40] sm:$0xff] }
  0x12   : > { %v256_v9 = vsel %vm254_vm0, %v222_v3, 0.0  ;;  %354 = vmatprep.subr.mxu0 %v222_v3  ;;  %424 = vmatprep.subr.mxu1 %v223_v5  ;;  %v260_v14 = vsel %vm254_vm0, %v223_v5, 0.0  ;;  %v262_v18 = vsel %vm254_vm0, %v191_v2, 0.0  ;;  %v264_v22 = vsel %vm254_vm0, %v224_v7, 0.0  ;;  %v1689_v28 = vld [vmem:[%s1662_s16 + $0x48] sm:$0xff]  ;;  %v1703_v35 = vld [vmem:[%s1662_s16 + $0x50] sm:$0xff] }
  0x13   : > { %v257_v13 = vadd.f32 %v256_v9, %v255_v4  ;;  %355 = vmatpush1.xpose.msra.mxu0 %v189_v0  ;;  %425 = vmatpush1.xpose.msra.mxu1 %v190_v1  ;;  %v228_v24 = vcombine.high %v195_v19, %v195_v19  ;;  %v1682_v25 = vcombine.high %v1677_v20, %v1677_v20  ;;  %v266_v26 = vsel %vm254_vm0, %v192_v6, 0.0  ;;  %v1706_v36 = vld [vmem:[%s1662_s16 + $0x58] sm:$0xff]  ;;  %v1724_v43 = vld [vmem:[%s1662_s16 + $0x60] sm:$0xff]  ;;  %v1727_v44 = vld [vmem:[%s1662_s16 + $0x68] sm:$0xff] }
  0x14   : > { %388 = vmatprep.mubr.f32.mxu0 %v222_v3  ;;  %458 = vmatprep.mubr.f32.mxu1 %v223_v5  ;;  %v268_v30 = vsel %vm254_vm0, %v225_v8, 0.0  ;;  %v1695_v32 = vcombine.high %v1686_v27, %v1686_v27  ;;  %v1699_v33 = vcombine.high %v1689_v28, %v1689_v28  ;;  %v270_v34 = vsel %vm254_vm0, %v193_v11, 0.0  ;;  %v203_v51 = vld [vmem:[%s1662_s16 + $0x70] sm:$0xff]  ;;  %v204_v52 = vld [vmem:[%s1662_s16 + $0x78] sm:$0xff] }
  0x15   : > { %v259_v15 = vadd.f32 %v258_v10, %v257_v13  ;;  %494 = vmatprep.subr.mxu0 %v224_v7  ;;  %564 = vmatprep.subr.mxu1 %v225_v8  ;;  %v272_v38 = vsel %vm254_vm0, %v226_v16, 0.0  ;;  %v1715_v40 = vcombine.high %v1703_v35, %v1703_v35  ;;  %v1719_v41 = vcombine.high %v1706_v36, %v1706_v36 }
  0x16   : > { %389 = vmatmul.mubr.f32.vlgmr.msra.gmra.mxu0 %v189_v0  ;;  %459 = vmatmul.mubr.f32.vlgmr.msra.gmra.mxu1 %v190_v1  ;;  %v274_v42 = vsel %vm254_vm0, %v194_v12, 0.0  ;;  %v276_v46 = vsel %vm254_vm0, %v227_v17, 0.0  ;;  %v234_v48 = vcombine.high %v1724_v43, %v1724_v43  ;;  %v235_v49 = vcombine.high %v1727_v44, %v1727_v44 }
  0x17   : > { %v261_v21 = vadd.f32 %v260_v14, %v259_v15  ;;  %495 = vmatpush1.xpose.msra.mxu0 %v191_v2  ;;  %565 = vmatpush1.xpose.msra.mxu1 %v192_v6  ;;  %v278_v50 = vsel %vm254_vm0, %v195_v19, 0.0  ;;  %v280_v54 = vsel %vm254_vm0, %v228_v24, 0.0  ;;  %v236_v56 = vcombine.high %v203_v51, %v203_v51 }
  0x18   : > { %528 = vmatprep.mubr.f32.mxu0 %v224_v7  ;;  %598 = vmatprep.mubr.f32.mxu1 %v225_v8  ;;  %v237_v57 = vcombine.high %v204_v52, %v204_v52  ;;  %v282_v58 = vsel %vm254_vm0, %v1677_v20, 0.0  ;;  %v284_v60 = vsel %vm254_vm0, %v1682_v25, 0.0  ;;  %v286_v62 = vsel %vm254_vm0, %v1686_v27, 0.0 }
  0x19   : > { %v263_v23 = vadd.f32 %v262_v18, %v261_v21  ;;  %634 = vmatprep.subr.mxu0 %v226_v16  ;;  %704 = vmatprep.subr.mxu1 %v227_v17  ;;  %v288_v0 = vsel %vm254_vm0, %v1695_v32, 0.0  ;;  %v292_v4 = vsel %vm254_vm0, %v1699_v33, 0.0  ;;  %v296_v8 = vsel %vm254_vm0, %v1715_v40, 0.0 }
  0x1a   : > { %529 = vmatmul.mubr.f32.vlgmr.msra.gmra.mxu0 %v191_v2  ;;  %599 = vmatmul.mubr.f32.vlgmr.msra.gmra.mxu1 %v192_v6  ;;  %v290_v2 = vsel %vm254_vm0, %v1689_v28, 0.0  ;;  %v294_v6 = vsel %vm254_vm0, %v1703_v35, 0.0  ;;  %v298_v10 = vsel %vm254_vm0, %v1706_v36, 0.0  ;;  %v302_v14 = vsel %vm254_vm0, %v1724_v43, 0.0 }
  0x1b   : > { %v265_v29 = vadd.f32 %v264_v22, %v263_v23  ;;  %635 = vmatpush1.xpose.msra.mxu0 %v193_v11  ;;  %705 = vmatpush1.xpose.msra.mxu1 %v194_v12  ;;  %v306_v18 = vsel %vm254_vm0, %v1727_v44, 0.0  ;;  %v310_v22 = vsel %vm254_vm0, %v203_v51, 0.0 }
  0x1c   : > { %668 = vmatprep.mubr.f32.mxu0 %v226_v16  ;;  %738 = vmatprep.mubr.f32.mxu1 %v227_v17  ;;  %v304_v16 = vsel %vm254_vm0, %v234_v48, 0.0 }
  0x1d   : > { %v267_v31 = vadd.f32 %v266_v26, %v265_v29  ;;  %774 = vmatprep.subr.mxu0 %v228_v24  ;;  %844 = vmatprep.subr.mxu1 %v1682_v25  ;;  %v314_v26 = vsel %vm254_vm0, %v204_v52, 0.0 }
  0x1e   : > { %669 = vmatmul.mubr.f32.vlgmr.msra.gmra.mxu0 %v193_v11  ;;  %739 = vmatmul.mubr.f32.vlgmr.msra.gmra.mxu1 %v194_v12  ;;  %v300_v12 = vsel %vm254_vm0, %v1719_v41, 0.0 }
  0x1f   : > { %v269_v37 = vadd.f32 %v268_v30, %v267_v31  ;;  %775 = vmatpush1.xpose.msra.mxu0 %v195_v19  ;;  %845 = vmatpush1.xpose.msra.mxu1 %v1677_v20  ;;  %v1622_v31 = vmov 0.0  }
  0x20   : > { %808 = vmatprep.mubr.f32.mxu0 %v228_v24  ;;  %878 = vmatprep.mubr.f32.mxu1 %v1682_v25  ;;  %v312_v24 = vsel %vm254_vm0, %v236_v56, 0.0  ;;  %188 = vst.msk [vmem:[%s1790_s20] sm:$0xf] %vm187_vm1, %v1622_v31 }
  0x21   : > { %v271_v39 = vadd.f32 %v270_v34, %v269_v37  ;;  %914 = vmatprep.subr.mxu0 %v1695_v32  ;;  %984 = vmatprep.subr.mxu1 %v1699_v33  ;;  %186 = vst.msk [vmem:[%s176_s23] sm:$0xf] %vm185_vm2, %v1622_v31 }
  0x22   : > { %809 = vmatmul.mubr.f32.vlgmr.msra.gmra.mxu0 %v195_v19  ;;  %879 = vmatmul.mubr.f32.vlgmr.msra.gmra.mxu1 %v1677_v20  ;;  %v308_v20 = vsel %vm254_vm0, %v235_v49, 0.0 }
  0x23   : > { %v273_v45 = vadd.f32 %v272_v38, %v271_v39  ;;  %915 = vmatpush1.xpose.msra.mxu0 %v1686_v27  ;;  %985 = vmatpush1.xpose.msra.mxu1 %v1689_v28 }
  0x24   : > { %948 = vmatprep.mubr.f32.mxu0 %v1695_v32  ;;  %1018 = vmatprep.mubr.f32.mxu1 %v1699_v33 }
  0x25   : > { %v275_v47 = vadd.f32 %v274_v42, %v273_v45  ;;  %1054 = vmatprep.subr.mxu0 %v1715_v40  ;;  %1124 = vmatprep.subr.mxu1 %v1719_v41 }
  0x26   : > { %949 = vmatmul.mubr.f32.vlgmr.msra.gmra.mxu0 %v1686_v27  ;;  %1019 = vmatmul.mubr.f32.vlgmr.msra.gmra.mxu1 %v1689_v28  ;;  %v316_v28 = vsel %vm254_vm0, %v237_v57, 0.0 }
  0x27   : > { %v277_v53 = vadd.f32 %v276_v46, %v275_v47  ;;  %1055 = vmatpush1.xpose.msra.mxu0 %v1703_v35  ;;  %1125 = vmatpush1.xpose.msra.mxu1 %v1706_v36 }
  0x28   : > { %1088 = vmatprep.mubr.f32.mxu0 %v1715_v40  ;;  %1158 = vmatprep.mubr.f32.mxu1 %v1719_v41  ;;  %v205_v37 = vld [vmem:[%s176_s23] sm:$0xf] }
  0x29   : > { %v279_v55 = vadd.f32 %v278_v50, %v277_v53  ;;  %1194 = vmatprep.subr.mxu0 %v234_v48  ;;  %1264 = vmatprep.subr.mxu1 %v235_v49 }
  0x2a   : > { %1089 = vmatmul.mubr.f32.vlgmr.msra.gmra.mxu0 %v1703_v35  ;;  %1159 = vmatmul.mubr.f32.vlgmr.msra.gmra.mxu1 %v1706_v36 }
  0x2b   : > { %v281_v59 = vadd.f32 %v280_v54, %v279_v55  ;;  %1195 = vmatpush1.xpose.msra.mxu0 %v1724_v43  ;;  %1265 = vmatpush1.xpose.msra.mxu1 %v1727_v44 }
  0x2c   : > { %1228 = vmatprep.mubr.f32.mxu0 %v234_v48  ;;  %1298 = vmatprep.mubr.f32.mxu1 %v235_v49 }
  0x2d   : > { %v283_v61 = vadd.f32 %v282_v58, %v281_v59  ;;  %1334 = vmatprep.subr.mxu0 %v236_v56  ;;  %1404 = vmatprep.subr.mxu1 %v237_v57 }
  0x2e   : > { %1229 = vmatmul.mubr.f32.vlgmr.msra.gmra.mxu0 %v1724_v43  ;;  %1299 = vmatmul.mubr.f32.vlgmr.msra.gmra.mxu1 %v1727_v44 }
  0x2f   : > { %v285_v63 = vadd.f32 %v284_v60, %v283_v61  ;;  %1335 = vmatpush1.xpose.msra.mxu0 %v203_v51  ;;  %1405 = vmatpush1.xpose.msra.mxu1 %v204_v52 }
  0x30   : > { %1368 = vmatprep.mubr.f32.mxu0 %v236_v56  ;;  %1438 = vmatprep.mubr.f32.mxu1 %v237_v57 }
  0x31   : > { %v287_v1 = vadd.f32 %v286_v62, %v285_v63 }
  0x32   : > { %1369 = vmatmul.mubr.f32.vlgmr.msra.gmra.mxu0 %v203_v51  ;;  %1439 = vmatmul.mubr.f32.vlgmr.msra.gmra.mxu1 %v204_v52 }
  0x33   : > { %v289_v3 = vadd.f32 %v288_v0, %v287_v1 }
  0x35   : > { %v291_v5 = vadd.f32 %v290_v2, %v289_v3 }
  0x37   : > { %v293_v7 = vadd.f32 %v292_v4, %v291_v5 }
  0x39   : > { %v295_v9 = vadd.f32 %v294_v6, %v293_v7 }
  0x3b   : > { %v297_v11 = vadd.f32 %v296_v8, %v295_v9 }
  0x3d   : > { %v299_v13 = vadd.f32 %v298_v10, %v297_v11 }
  0x3f   : > { %v301_v15 = vadd.f32 %v300_v12, %v299_v13 }
  0x41   : > { %v303_v17 = vadd.f32 %v302_v14, %v301_v15  ;;  %v323_v15 = vld [vmem:[%s1790_s20] sm:$0xf] }
  0x43   : > { %v305_v19 = vadd.f32 %v304_v16, %v303_v17 }
  0x45   : > { %v307_v21 = vadd.f32 %v306_v18, %v305_v19 }
  0x47   : > { %v309_v23 = vadd.f32 %v308_v20, %v307_v21 }
  0x49   : > { %v311_v25 = vadd.f32 %v310_v22, %v309_v23 }
  0x4b   : > { %v313_v27 = vadd.f32 %v312_v24, %v311_v25 }
  0x4d   : > { %v315_v29 = vadd.f32 %v314_v26, %v313_v27 }
  0x4f   : > { %v317_v30 = vadd.f32 %v316_v28, %v315_v29 }
  0x51   : > { %318 = vadd.xlane.f32.xlu0 %v317_v30 }
  0xd6   : > { %v390_v32 = vpop.f32.mrf.mxu0  ;;  %v460_v33 = vpop.f32.mrf.mxu1 }
  0xd7   : > { %v461_v36 = vadd.f32 %v460_v33, %v390_v32 }
  0xd8   : > { %v392_v34 = vpop.f32.mrf.mxu0  ;;  %v462_v35 = vpop.f32.mrf.mxu1 }
  0xda   : > { %v530_v38 = vpop.f32.mrf.mxu0  ;;  %v600_v39 = vpop.f32.mrf.mxu1 }
  0xdb   : > { %v531_v40 = vadd.f32 %v530_v38, %v461_v36  ;;  %v319_v41 = vpop.xlane.xlu0 %318 }
  0xdc   : > { %v532_v42 = vpop.f32.mrf.mxu0  ;;  %v602_v43 = vpop.f32.mrf.mxu1  ;;  %v320_v44 = vadd.f32 %v319_v41, %v205_v37 }
  0xdd   : > { %v601_v45 = vadd.f32 %v600_v39, %v531_v40 }
  0xde   : > { %v670_v46 = vpop.f32.mrf.mxu0  ;;  %v740_v47 = vpop.f32.mrf.mxu1  ;;  %322 = vst.msk [vmem:[%s176_s23] sm:$0xf] %vm185_vm2, %v320_v44 }
  0xdf   : > { %v671_v48 = vadd.f32 %v670_v46, %v601_v45 }
  0xe0   : > { %v672_v49 = vpop.f32.mrf.mxu0  ;;  %v742_v50 = vpop.f32.mrf.mxu1 }
  0xe1   : > { %v741_v51 = vadd.f32 %v740_v47, %v671_v48 }
  0xe2   : > { %v810_v52 = vpop.f32.mrf.mxu0  ;;  %v880_v53 = vpop.f32.mrf.mxu1 }
  0xe3   : > { %v811_v54 = vadd.f32 %v810_v52, %v741_v51 }
  0xe4   : > { %v812_v55 = vpop.f32.mrf.mxu0  ;;  %v882_v56 = vpop.f32.mrf.mxu1 }
  0xe5   : > { %v881_v57 = vadd.f32 %v880_v53, %v811_v54 }
  0xe6   : > { %v950_v58 = vpop.f32.mrf.mxu0  ;;  %v1020_v59 = vpop.f32.mrf.mxu1 }
  0xe7   : > { %v951_v60 = vadd.f32 %v950_v58, %v881_v57 }
  0xe8   : > { %v952_v61 = vpop.f32.mrf.mxu0  ;;  %v1022_v62 = vpop.f32.mrf.mxu1 }
  0xe9   : > { %v1021_v63 = vadd.f32 %v1020_v59, %v951_v60 }
  0xea   : > { %v1090_v0 = vpop.f32.mrf.mxu0  ;;  %v1160_v1 = vpop.f32.mrf.mxu1 }
  0xeb   : > { %v1091_v2 = vadd.f32 %v1090_v0, %v1021_v63 }
  0xec   : > { %v1092_v3 = vpop.f32.mrf.mxu0  ;;  %v1162_v4 = vpop.f32.mrf.mxu1 }
  0xed   : > { %v1161_v5 = vadd.f32 %v1160_v1, %v1091_v2 }
  0xee   : > { %v1230_v6 = vpop.f32.mrf.mxu0  ;;  %v1300_v7 = vpop.f32.mrf.mxu1 }
  0xef   : > { %v1231_v8 = vadd.f32 %v1230_v6, %v1161_v5 }
  0xf0   : > { %v1232_v9 = vpop.f32.mrf.mxu0  ;;  %v1302_v10 = vpop.f32.mrf.mxu1 }
  0xf1   : > { %v1301_v11 = vadd.f32 %v1300_v7, %v1231_v8 }
  0xf2   : > { %v1370_v12 = vpop.f32.mrf.mxu0  ;;  %v1440_v13 = vpop.f32.mrf.mxu1 }
  0xf3   : > { %v1371_v14 = vadd.f32 %v1370_v12, %v1301_v11 }
  0xf4   : > { %v1372_v16 = vpop.f32.mrf.mxu0  ;;  %v1442_v17 = vpop.f32.mrf.mxu1 }
  0xf5   : > { %v1441_v18 = vadd.f32 %v1440_v13, %v1371_v14 }
  0xf7   : > { %v1444_v19 = vadd.f32 %v1441_v18, %v323_v15 }
  0xf9   : > { %1446 = vst.msk [vmem:[%s1790_s20] sm:$0xf] %vm187_vm1, %v1444_v19 }
  0xfa PF: > { %s13_s11 = sadd.s32 1, %s1620_s11   ;;  %s1814_s9 = smov %s1616_s10 }
  0xfb   : > { %p10_p5 = scmp.ge.s32.totalorder %s13_s11, 4   ;;  %s1815_s10 = smov %s1817_s12 }
  0xfd   :  { %12 = sbr.rel (!%p10_p5) target bundleno = 2 (0x2), region = 70 }

// kernel: attention_module.3
= control target key start
LH: loop header
LB: loop body
LE: loop exit
PB: predicated region body
PF: predicated region fallthrough
CT: control target
= control target key end

     0   :  { %s2924_s15 = smov 0   ;;  %s2926_s16 = smov 0   ;;  %s3771_s0 = inlined_call_operand.vmem [shape: f32[2,4,4096], index: 0, kind: input, shape index: {}]   ;;  %s3772_s1 = inlined_call_operand.vmem [shape: f32[16,4], index: 1, kind: input, shape index: {}]   ;;  %s3773_s2 = inlined_call_operand.vmem [shape: f32[8,1], index: 2, kind: input, shape index: {}]   ;;  %s3774_s3 = inlined_call_operand.vmem [shape: f32[2,8,4096], index: 3, kind: output, shape index: {0}]   ;;  %s3775_s4 = inlined_call_operand.vmem [shape: f32[2,8,4096], index: 4, kind: output, shape index: {1}]  }
   0x1   :  { %s2928_s17 = smov 0  }
   0x2 LB: > { %s27_s18 = sadd.s32 1, %s2891_s16  ;;  %p2626_p0 = scmp.ge.s32.totalorder %s2895_s17, 1  ;;  %s2895_s17 = sphi %s2928_s17, %s15_s17   ;;  %s2891_s16 = sphi %s2926_s16, %s3777_s16   ;;  %s2887_s15 = sphi %s2924_s15, %s3776_s15  }
   0x3   : > { %p29_p1 = scmp.ge.s32.totalorder %s27_s18, 2  ;;  %p188_p2 = scmp.lt.s32.totalorder %s2895_s17, 3 }
   0x5   : > { %s3779_s18 = smov (%p29_p1, %s27_s18), 0  ;;  %p189_p3 = pnand %p2626_p0, %p188_p2 }
   0x6   : > { %p232_p4 = scmp.lt.s32.totalorder (!%p189_p3), %s2887_s15, 1 }
   0x7   : > { %192 = sbr.rel (%p189_p3) target bundleno = 464 (0x1d0), region = 32 }
   0xc   : > { %v2897_v0 = vmov 0.0   ;;  %v1615_v1 = vld [vmem:[%s3773_s2] sm:$0xff]  ;;  %s3781_s15 = smov (!%p232_p4, %s2887_s15), 1  ;;  %v2898_v2 = vmov 0   ;;  %vm318_vm0 = vcmask 1043456   ;;  %vm311_vm1 = vcmask 31744  }
   0xd   : > { %447 = vmatprep.mubr.f32.mxu0 %v2897_v0  ;;  %524 = vmatprep.mubr.f32.mxu1 %v2897_v0  ;;  %s2699_s21 = sshll.u32 %s3781_s15, 7  ;;  %v2962_v9 = vld [vmem:[%s3772_s1] sm:$0xff]  ;;  %v2979_v14 = vld [vmem:[%s3772_s1 + $0x8] sm:$0xff]  ;;  %s2700_s29 = sshll.u32 %s3781_s15, 8 }
   0xe   : > { %2728 = vset.pattern.permute.xlu0 %v2898_v2  ;;  %s2953_s24 = scalar_lea.vmem %s3771_s0, %s2699_s21  ;;  %s3317_s6 = scalar_lea.vmem %s3774_s3, %s2700_s29 }
   0xf   : > { %1618 = vperm.xlu0 %2728, %v1615_v1   ;;  %v261_v3 = vld [vmem:[%s2953_s24] sm:$0xff]  ;;  %v262_v4 = vld [vmem:[%s2953_s24 + $0x8] sm:$0xff]  ;;  %v263_v5 = vld [vmem:[%s2953_s24 + $0x10] sm:$0xff]  ;;  %s3324_s9 = scalar_lea.vmem %s3775_s4, %s2700_s29 }
  0x10   : > { %v295_v6 = vcombine.high %v261_v3, %v261_v3  ;;  %v296_v7 = vcombine.high %v262_v4, %v262_v4  ;;  %v264_v8 = vld [vmem:[%s2953_s24 + $0x18] sm:$0xff]  ;;  %v297_v10 = vcombine.high %v263_v5, %v263_v5  ;;  %v265_v12 = vld [vmem:[%s2953_s24 + $0x20] sm:$0xff]  ;;  %v266_v13 = vld [vmem:[%s2953_s24 + $0x28] sm:$0xff] }
  0x11   : > { %v298_v11 = vcombine.high %v264_v8, %v264_v8  ;;  %v299_v15 = vcombine.high %v265_v12, %v265_v12  ;;  %v300_v16 = vcombine.high %v266_v13, %v266_v13  ;;  %v267_v17 = vld [vmem:[%s2953_s24 + $0x30] sm:$0xff]  ;;  %v268_v18 = vld [vmem:[%s2953_s24 + $0x38] sm:$0xff]  ;;  %v269_v21 = vld [vmem:[%s2953_s24 + $0x40] sm:$0xff] }
  0x12   : > { %2633 = vmatprep.subr.msk.mxu0 %vm318_vm0, %v295_v6  ;;  %2637 = vmatprep.subr.msk.mxu1 %vm318_vm0, %v296_v7  ;;  %v301_v19 = vcombine.high %v267_v17, %v267_v17  ;;  %v302_v20 = vcombine.high %v268_v18, %v268_v18  ;;  %v270_v22 = vld [vmem:[%s2953_s24 + $0x48] sm:$0xff]  ;;  %v303_v23 = vcombine.high %v269_v21, %v269_v21  ;;  %v271_v25 = vld [vmem:[%s2953_s24 + $0x50] sm:$0xff]  ;;  %v272_v26 = vld [vmem:[%s2953_s24 + $0x58] sm:$0xff] }
  0x13   : > { %2634 = vmatpush1.msk.msra.mxu0 %vm318_vm0, %v261_v3  ;;  %2638 = vmatpush1.msk.msra.mxu1 %vm318_vm0, %v262_v4  ;;  %v304_v24 = vcombine.high %v270_v22, %v270_v22  ;;  %v305_v27 = vcombine.high %v271_v25, %v271_v25  ;;  %v306_v28 = vcombine.high %v272_v26, %v272_v26  ;;  %v273_v29 = vld [vmem:[%s2953_s24 + $0x60] sm:$0xff]  ;;  %v274_v30 = vld [vmem:[%s2953_s24 + $0x68] sm:$0xff]  ;;  %v275_v33 = vld [vmem:[%s2953_s24 + $0x70] sm:$0xff] }
  0x14   : > { %2635 = vmatmul.mubr.msk.f32.vlgmr.msra.gmra.mxu0 %vm311_vm1, %v2962_v9  ;;  %2639 = vmatmul.mubr.msk.f32.vlgmr.msra.gmra.mxu1 %vm311_vm1, %v2962_v9  ;;  %v307_v31 = vcombine.high %v273_v29, %v273_v29  ;;  %v308_v32 = vcombine.high %v274_v30, %v274_v30  ;;  %v276_v34 = vld [vmem:[%s2953_s24 + $0x78] sm:$0xff]  ;;  %v309_v35 = vcombine.high %v275_v33, %v275_v33 }
  0x15   : > { %2641 = vmatprep.subr.msk.mxu0 %vm318_vm0, %v297_v10  ;;  %2645 = vmatprep.subr.msk.mxu1 %vm318_vm0, %v298_v11  ;;  %v310_v36 = vcombine.high %v276_v34, %v276_v34 }
  0x16   : > { %2642 = vmatpush1.msk.msra.mxu0 %vm318_vm0, %v263_v5  ;;  %2646 = vmatpush1.msk.msra.mxu1 %vm318_vm0, %v264_v8 }
  0x17   : > { %453 = vmatprep.mubr.f32.mxu0 %v2897_v0  ;;  %530 = vmatprep.mubr.f32.mxu1 %v2897_v0 }
  0x18   : > { %2636 = vmatmul.mubr.msk.f32.gmra.mxu0 %vm311_vm1, %v2979_v14  ;;  %2640 = vmatmul.mubr.msk.f32.gmra.mxu1 %vm311_vm1, %v2979_v14 }
  0x19   : > { %601 = vmatprep.mubr.f32.mxu0 %v2897_v0  ;;  %678 = vmatprep.mubr.f32.mxu1 %v2897_v0 }
  0x1a   : > { %2649 = vmatprep.subr.msk.mxu0 %vm318_vm0, %v299_v15  ;;  %2653 = vmatprep.subr.msk.mxu1 %vm318_vm0, %v300_v16 }
  0x1c   : > { %2643 = vmatmul.mubr.msk.f32.vlgmr.msra.gmra.mxu0 %vm311_vm1, %v2962_v9  ;;  %2647 = vmatmul.mubr.msk.f32.vlgmr.msra.gmra.mxu1 %vm311_vm1, %v2962_v9 }
  0x1d   : > { %2650 = vmatpush1.msk.msra.mxu0 %vm318_vm0, %v265_v12  ;;  %2654 = vmatpush1.msk.msra.mxu1 %vm318_vm0, %v266_v13 }
  0x1e   : > { %607 = vmatprep.mubr.f32.mxu0 %v2897_v0  ;;  %684 = vmatprep.mubr.f32.mxu1 %v2897_v0 }
  0x1f   : > { %2657 = vmatprep.subr.msk.mxu0 %vm318_vm0, %v301_v19  ;;  %2661 = vmatprep.subr.msk.mxu1 %vm318_vm0, %v302_v20 }
  0x20   : > { %2644 = vmatmul.mubr.msk.f32.gmra.mxu0 %vm311_vm1, %v2979_v14  ;;  %2648 = vmatmul.mubr.msk.f32.gmra.mxu1 %vm311_vm1, %v2979_v14 }
  0x21   : > { %755 = vmatprep.mubr.f32.mxu0 %v2897_v0  ;;  %832 = vmatprep.mubr.f32.mxu1 %v2897_v0 }
  0x24   : > { %2651 = vmatmul.mubr.msk.f32.vlgmr.msra.gmra.mxu0 %vm311_vm1, %v2962_v9  ;;  %2655 = vmatmul.mubr.msk.f32.vlgmr.msra.gmra.mxu1 %vm311_vm1, %v2962_v9 }
  0x25   : > { %2658 = vmatpush1.msk.msra.mxu0 %vm318_vm0, %v267_v17  ;;  %2662 = vmatpush1.msk.msra.mxu1 %vm318_vm0, %v268_v18 }
  0x26   : > { %761 = vmatprep.mubr.f32.mxu0 %v2897_v0  ;;  %838 = vmatprep.mubr.f32.mxu1 %v2897_v0 }
  0x27   : > { %2665 = vmatprep.subr.msk.mxu0 %vm318_vm0, %v303_v23  ;;  %2669 = vmatprep.subr.msk.mxu1 %vm318_vm0, %v304_v24 }
  0x28   : > { %2652 = vmatmul.mubr.msk.f32.gmra.mxu0 %vm311_vm1, %v2979_v14  ;;  %2656 = vmatmul.mubr.msk.f32.gmra.mxu1 %vm311_vm1, %v2979_v14 }
  0x29   : > { %909 = vmatprep.mubr.f32.mxu0 %v2897_v0  ;;  %986 = vmatprep.mubr.f32.mxu1 %v2897_v0 }
  0x2c   : > { %2659 = vmatmul.mubr.msk.f32.vlgmr.msra.gmra.mxu0 %vm311_vm1, %v2962_v9  ;;  %2663 = vmatmul.mubr.msk.f32.vlgmr.msra.gmra.mxu1 %vm311_vm1, %v2962_v9 }
  0x2d   : > { %2666 = vmatpush1.msk.msra.mxu0 %vm318_vm0, %v269_v21  ;;  %2670 = vmatpush1.msk.msra.mxu1 %vm318_vm0, %v270_v22 }
  0x2e   : > { %915 = vmatprep.mubr.f32.mxu0 %v2897_v0  ;;  %992 = vmatprep.mubr.f32.mxu1 %v2897_v0 }
  0x2f   : > { %2673 = vmatprep.subr.msk.mxu0 %vm318_vm0, %v305_v27  ;;  %2677 = vmatprep.subr.msk.mxu1 %vm318_vm0, %v306_v28 }
  0x30   : > { %2660 = vmatmul.mubr.msk.f32.gmra.mxu0 %vm311_vm1, %v2979_v14  ;;  %2664 = vmatmul.mubr.msk.f32.gmra.mxu1 %vm311_vm1, %v2979_v14 }
  0x31   : > { %1063 = vmatprep.mubr.f32.mxu0 %v2897_v0  ;;  %1140 = vmatprep.mubr.f32.mxu1 %v2897_v0 }
  0x34   : > { %2667 = vmatmul.mubr.msk.f32.vlgmr.msra.gmra.mxu0 %vm311_vm1, %v2962_v9  ;;  %2671 = vmatmul.mubr.msk.f32.vlgmr.msra.gmra.mxu1 %vm311_vm1, %v2962_v9 }
  0x35   : > { %2674 = vmatpush1.msk.msra.mxu0 %vm318_vm0, %v271_v25  ;;  %2678 = vmatpush1.msk.msra.mxu1 %vm318_vm0, %v272_v26 }
  0x36   : > { %1069 = vmatprep.mubr.f32.mxu0 %v2897_v0  ;;  %1146 = vmatprep.mubr.f32.mxu1 %v2897_v0 }
  0x37   : > { %2681 = vmatprep.subr.msk.mxu0 %vm318_vm0, %v307_v31  ;;  %2685 = vmatprep.subr.msk.mxu1 %vm318_vm0, %v308_v32 }
  0x38   : > { %2668 = vmatmul.mubr.msk.f32.gmra.mxu0 %vm311_vm1, %v2979_v14  ;;  %2672 = vmatmul.mubr.msk.f32.gmra.mxu1 %vm311_vm1, %v2979_v14 }
  0x39   : > { %1217 = vmatprep.mubr.f32.mxu0 %v2897_v0  ;;  %1294 = vmatprep.mubr.f32.mxu1 %v2897_v0 }
  0x3c   : > { %2675 = vmatmul.mubr.msk.f32.vlgmr.msra.gmra.mxu0 %vm311_vm1, %v2962_v9  ;;  %2679 = vmatmul.mubr.msk.f32.vlgmr.msra.gmra.mxu1 %vm311_vm1, %v2962_v9 }
  0x3d   : > { %2682 = vmatpush1.msk.msra.mxu0 %vm318_vm0, %v273_v29  ;;  %2686 = vmatpush1.msk.msra.mxu1 %vm318_vm0, %v274_v30 }
  0x3e   : > { %1223 = vmatprep.mubr.f32.mxu0 %v2897_v0  ;;  %1300 = vmatprep.mubr.f32.mxu1 %v2897_v0 }
  0x3f   : > { %2689 = vmatprep.subr.msk.mxu0 %vm318_vm0, %v309_v35  ;;  %2693 = vmatprep.subr.msk.mxu1 %vm318_vm0, %v310_v36 }
  0x40   : > { %2676 = vmatmul.mubr.msk.f32.gmra.mxu0 %vm311_vm1, %v2979_v14  ;;  %2680 = vmatmul.mubr.msk.f32.gmra.mxu1 %vm311_vm1, %v2979_v14 }
  0x41   : > { %1371 = vmatprep.mubr.f32.mxu0 %v2897_v0  ;;  %1448 = vmatprep.mubr.f32.mxu1 %v2897_v0 }
  0x44   : > { %2683 = vmatmul.mubr.msk.f32.vlgmr.msra.gmra.mxu0 %vm311_vm1, %v2962_v9  ;;  %2687 = vmatmul.mubr.msk.f32.vlgmr.msra.gmra.mxu1 %vm311_vm1, %v2962_v9 }
  0x45   : > { %2690 = vmatpush1.msk.msra.mxu0 %vm318_vm0, %v275_v33  ;;  %2694 = vmatpush1.msk.msra.mxu1 %vm318_vm0, %v276_v34 }
  0x46   : > { %1377 = vmatprep.mubr.f32.mxu0 %v2897_v0  ;;  %1454 = vmatprep.mubr.f32.mxu1 %v2897_v0 }
  0x48   : > { %2684 = vmatmul.mubr.msk.f32.gmra.mxu0 %vm311_vm1, %v2979_v14  ;;  %2688 = vmatmul.mubr.msk.f32.gmra.mxu1 %vm311_vm1, %v2979_v14 }
  0x49   : > { %1525 = vmatprep.mubr.f32.mxu0 %v2897_v0  ;;  %1602 = vmatprep.mubr.f32.mxu1 %v2897_v0 }
  0x4c   : > { %2691 = vmatmul.mubr.msk.f32.vlgmr.msra.gmra.mxu0 %vm311_vm1, %v2962_v9  ;;  %2695 = vmatmul.mubr.msk.f32.vlgmr.msra.gmra.mxu1 %vm311_vm1, %v2962_v9 }
  0x4d   : > { %1531 = vmatprep.mubr.f32.mxu0 %v2897_v0  ;;  %1608 = vmatprep.mubr.f32.mxu1 %v2897_v0 }
  0x50   : > { %2692 = vmatmul.mubr.msk.f32.gmra.mxu0 %vm311_vm1, %v2979_v14  ;;  %2696 = vmatmul.mubr.msk.f32.gmra.mxu1 %vm311_vm1, %v2979_v14 }
  0x8a   : > { %v3111_v39 = vpop.permute.xlu0 %1618 }
  0xd4   : > { %v3107_v37 = vpop.f32.mrf.mxu0  ;;  %v3109_v38 = vpop.f32.mrf.mxu1 }
  0xd6   : > { %v3113_v40 = vpop.f32.mrf.mxu0  ;;  %v3115_v41 = vpop.f32.mrf.mxu1 }
  0xd8   : > { %v455_v42 = vpop.f32.mrf.mxu0  ;;  %v532_v43 = vpop.f32.mrf.mxu1 }
  0xd9   : > { %v1621_v44 = vadd.f32 %v3111_v39, %v455_v42  ;;  %v1623_v45 = vadd.f32 %v3111_v39, %v532_v43 }
  0xda   : > { %v457_v46 = vpop.f32.mrf.mxu0  ;;  %v534_v47 = vpop.f32.mrf.mxu1 }
  0xdb   : > { %vm1653_vm2 = vcmp.gt.f32.partialorder %v1621_v44, 0.0  ;;  %v1685_v48 = vmul.f32 0.01, %v1621_v44  ;;  %vm1655_vm3 = vcmp.gt.f32.partialorder %v1623_v45, 0.0  ;;  %v1687_v49 = vmul.f32 0.01, %v1623_v45 }
  0xdc   : > { %v1622_v50 = vadd.f32 %v3111_v39, %v457_v46  ;;  %v1624_v51 = vadd.f32 %v3111_v39, %v534_v47  ;;  %v3121_v52 = vpop.f32.mrf.mxu0  ;;  %v3123_v53 = vpop.f32.mrf.mxu1 }
  0xdd   : > { %v3125_v54 = vsel %vm1653_vm2, %v1621_v44, %v1685_v48  ;;  %v3127_v55 = vsel %vm1655_vm3, %v1623_v45, %v1687_v49 }
  0xde   : > { %v1749_v56 = vrot.slane %v3125_v54, 4  ;;  %v1761_v57 = vrot.slane %v3127_v55, 4  ;;  %vm1654_vm4 = vcmp.gt.f32.partialorder %v1622_v50, 0.0  ;;  %v1686_v58 = vmul.f32 0.01, %v1622_v50  ;;  %v3131_v59 = vpop.f32.mrf.mxu0  ;;  %v3133_v60 = vpop.f32.mrf.mxu1 }
  0xdf   : > { %vm1656_vm5 = vcmp.gt.f32.partialorder %v1624_v51, 0.0  ;;  %v1688_v61 = vmul.f32 0.01, %v1624_v51 }
  0xe0   : > { %v1750_v62 = vmax.f32 %v3125_v54, %v1749_v56  ;;  %v1762_v63 = vmax.f32 %v3127_v55, %v1761_v57  ;;  %v3137_v0 = vsel %vm1654_vm4, %v1622_v50, %v1686_v58  ;;  %v609_v1 = vpop.f32.mrf.mxu0  ;;  %v686_v2 = vpop.f32.mrf.mxu1 }
  0xe1   : > { %v1755_v3 = vrot.slane %v3137_v0, 4  ;;  %v3140_v4 = vsel %vm1656_vm5, %v1624_v51, %v1688_v61  ;;  %v1625_v5 = vadd.f32 %v3111_v39, %v609_v1  ;;  %v1627_v6 = vadd.f32 %v3111_v39, %v686_v2 }
  0xe2   : > { %v1751_v7 = vrot.slane %v1750_v62, 2  ;;  %v1763_v8 = vrot.slane %v1762_v63, 2  ;;  %v1767_v9 = vrot.slane %v3140_v4, 4  ;;  %v611_v10 = vpop.f32.mrf.mxu0  ;;  %v688_v11 = vpop.f32.mrf.mxu1 }
  0xe3   : > { %v1756_v12 = vmax.f32 %v3137_v0, %v1755_v3  ;;  %vm1657_vm6 = vcmp.gt.f32.partialorder %v1625_v5, 0.0  ;;  %v1689_v13 = vmul.f32 0.01, %v1625_v5  ;;  %vm1659_vm7 = vcmp.gt.f32.partialorder %v1627_v6, 0.0 }
  0xe4   : > { %v1752_v14 = vmax.f32 %v1750_v62, %v1751_v7  ;;  %v1764_v15 = vmax.f32 %v1762_v63, %v1763_v8  ;;  %v1768_v16 = vmax.f32 %v3140_v4, %v1767_v9  ;;  %v1691_v17 = vmul.f32 0.01, %v1627_v6  ;;  %v3147_v18 = vpop.f32.mrf.mxu0  ;;  %v3154_v27 = vpop.f32.mrf.mxu1 }
  0xe5   : > { %v1757_v19 = vrot.slane %v1756_v12, 2  ;;  %v3149_v20 = vsel %vm1657_vm6, %v1625_v5, %v1689_v13  ;;  %v1626_v21 = vadd.f32 %v3111_v39, %v611_v10  ;;  %v1628_v22 = vadd.f32 %v3111_v39, %v688_v11 }
  0xe6   : > { %v1753_v23 = vrot.slane %v1752_v14, 1  ;;  %v1765_v24 = vrot.slane %v1764_v15, 1  ;;  %v1769_v25 = vrot.slane %v1768_v16, 2  ;;  %v1773_v26 = vrot.slane %v3149_v20, 4  ;;  %v3156_v28 = vpop.f32.mrf.mxu0  ;;  %v3167_v48 = vpop.f32.mrf.mxu1 }
  0xe7   : > { %v1758_v29 = vmax.f32 %v1756_v12, %v1757_v19  ;;  %v3159_v30 = vsel %vm1659_vm7, %v1627_v6, %v1691_v17  ;;  %vm1658_vm8 = vcmp.gt.f32.partialorder %v1626_v21, 0.0  ;;  %v1690_v31 = vmul.f32 0.01, %v1626_v21 }
  0xe8   : > { %v1754_v32 = vmax.f32 %v1752_v14, %v1753_v23  ;;  %v1766_v33 = vmax.f32 %v1764_v15, %v1765_v24  ;;  %v1770_v34 = vmax.f32 %v1768_v16, %v1769_v25  ;;  %v1774_v35 = vmax.f32 %v3149_v20, %v1773_v26  ;;  %v763_v49 = vpop.f32.mrf.mxu0  ;;  %v840_v7 = vpop.f32.mrf.mxu1 }
  0xe9   : > { %v1759_v36 = vrot.slane %v1758_v29, 1  ;;  %v1785_v42 = vrot.slane %v3159_v30, 4  ;;  %v3163_v43 = vsel %vm1658_vm8, %v1626_v21, %v1690_v31  ;;  %vm1660_vm9 = vcmp.gt.f32.partialorder %v1628_v22, 0.0 }
  0xea   : > { %v1941_v44 = vsub.f32 %v3125_v54, %v1754_v32  ;;  %v1943_v45 = vsub.f32 %v3127_v55, %v1766_v33  ;;  %v1771_v46 = vrot.slane %v1770_v34, 1  ;;  %v1775_v47 = vrot.slane %v1774_v35, 2  ;;  %v765_v8 = vpop.f32.mrf.mxu0  ;;  %v842_v21 = vpop.f32.mrf.mxu1 }
  0xeb   : > { %v1760_v50 = vmax.f32 %v1758_v29, %v1759_v36  ;;  %v1786_v51 = vmax.f32 %v3159_v30, %v1785_v42  ;;  %v1779_v56 = vrot.slane %v3163_v43, 4  ;;  %v1692_v57 = vmul.f32 0.01, %v1628_v22 }
  0xec   : > { %v1973_v58 = vmul.f32 1.442695, %v1941_v44  ;;  %v1977_v61 = vmul.f32 1.442695, %v1943_v45  ;;  %v1772_v62 = vmax.f32 %v1770_v34, %v1771_v46  ;;  %v1776_v63 = vmax.f32 %v1774_v35, %v1775_v47 }
  0xed   : > { %v1942_v1 = vsub.f32 %v3137_v0, %v1760_v50  ;;  %v1787_v54 = vrot.slane %v1786_v51, 2  ;;  %v1780_v55 = vmax.f32 %v3163_v43, %v1779_v56  ;;  %v3174_v2 = vsel %vm1660_vm9, %v1628_v22, %v1692_v57  ;;  %v3182_v22 = vpop.f32.mrf.mxu0 }
  0xee   : > { %2745 = vpow2.f32 %v1973_v58  ;;  %v1944_v3 = vsub.f32 %v3140_v4, %v1772_v62  ;;  %v1777_v5 = vrot.slane %v1776_v63, 1  ;;  %v1791_v6 = vrot.slane %v3174_v2, 4 }
  0xef   : > { %2747 = vpow2.f32 %v1977_v61  ;;  %v1975_v9 = vmul.f32 1.442695, %v1942_v1  ;;  %v1788_v10 = vmax.f32 %v1786_v51, %v1787_v54  ;;  %v1781_v11 = vrot.slane %v1780_v55, 2  ;;  %v3192_v45 = vpop.f32.mrf.mxu0 }
  0xf0   : > { %v1979_v12 = vmul.f32 1.442695, %v1944_v3  ;;  %v1778_v0 = vmax.f32 %v1776_v63, %v1777_v5  ;;  %v1792_v13 = vmax.f32 %v3174_v2, %v1791_v6  ;;  %v1629_v14 = vadd.f32 %v3111_v39, %v763_v49 }
  0xf1   : > { %2749 = vpow2.f32 %v1975_v9  ;;  %v1789_v15 = vrot.slane %v1788_v10, 1  ;;  %v1782_v16 = vmax.f32 %v1780_v55, %v1781_v11  ;;  %v1631_v4 = vadd.f32 %v3111_v39, %v840_v7  ;;  %v917_v1 = vpop.f32.mrf.mxu0 }
  0xf2   : > { %2751 = vpow2.f32 %v1979_v12  ;;  %v1945_v17 = vsub.f32 %v3149_v20, %v1778_v0  ;;  %v1793_v19 = vrot.slane %v1792_v13, 2  ;;  %vm1661_vm10 = vcmp.gt.f32.partialorder %v1629_v14, 0.0 }
  0xf3   : > { %v1790_v23 = vmax.f32 %v1788_v10, %v1789_v15  ;;  %v1783_v24 = vrot.slane %v1782_v16, 1  ;;  %v1693_v25 = vmul.f32 0.01, %v1629_v14  ;;  %vm1663_vm11 = vcmp.gt.f32.partialorder %v1631_v4, 0.0 }
  0xf4   : > { %v1981_v26 = vmul.f32 1.442695, %v1945_v17  ;;  %v1794_v29 = vmax.f32 %v1792_v13, %v1793_v19  ;;  %v1695_v31 = vmul.f32 0.01, %v1631_v4  ;;  %v1630_v32 = vadd.f32 %v3111_v39, %v765_v8 }
  0xf5   : > { %v1947_v33 = vsub.f32 %v3159_v30, %v1790_v23  ;;  %v1784_v34 = vmax.f32 %v1782_v16, %v1783_v24  ;;  %v3186_v35 = vsel %vm1661_vm10, %v1629_v14, %v1693_v25  ;;  %v1632_v20 = vadd.f32 %v3111_v39, %v842_v21 }
  0xf6   : > { %2753 = vpow2.f32 %v1981_v26  ;;  %v1795_v36 = vrot.slane %v1794_v29, 1  ;;  %v1797_v42 = vrot.slane %v3186_v35, 4  ;;  %v3190_v44 = vsel %vm1663_vm11, %v1631_v4, %v1695_v31 }
  0xf7   : > { %v1985_v46 = vmul.f32 1.442695, %v1947_v33  ;;  %v1946_v47 = vsub.f32 %v3163_v43, %v1784_v34  ;;  %v1809_v49 = vrot.slane %v3190_v44, 4  ;;  %vm1662_vm12 = vcmp.gt.f32.partialorder %v1630_v32, 0.0 }
  0xf8   : > { %v1796_v30 = vmax.f32 %v1794_v29, %v1795_v36  ;;  %v1798_v50 = vmax.f32 %v3186_v35, %v1797_v42  ;;  %v1694_v51 = vmul.f32 0.01, %v1630_v32  ;;  %vm1664_vm13 = vcmp.gt.f32.partialorder %v1632_v20, 0.0 }
  0xf9   : > { %2755 = vpow2.f32 %v1985_v46  ;;  %v1983_v56 = vmul.f32 1.442695, %v1946_v47  ;;  %v1810_v57 = vmax.f32 %v3190_v44, %v1809_v49  ;;  %v1696_v58 = vmul.f32 0.01, %v1632_v20 }
  0xfa   : > { %v1948_v61 = vsub.f32 %v3174_v2, %v1796_v30  ;;  %v1799_v62 = vrot.slane %v1798_v50, 2  ;;  %v3199_v63 = vsel %vm1662_vm12, %v1630_v32, %v1694_v51  ;;  %v3213_v12 = vadd.f32 %v3111_v39, %v917_v1 }
  0xfb   : > { %v3201_v43 = vpop.eup %2745  ;;  %2757 = vpow2.f32 %v1983_v56  ;;  %v1811_v54 = vrot.slane %v1810_v57, 2  ;;  %v1803_v55 = vrot.slane %v3199_v63, 4  ;;  %v3204_v3 = vsel %vm1664_vm13, %v1632_v20, %v1696_v58 }
  0xfc   : > { %v3206_v5 = vpop.eup %2747  ;;  %v2037_v6 = vrot.slane %v3201_v43, 4  ;;  %v1987_v7 = vmul.f32 1.442695, %v1948_v61  ;;  %v1800_v8 = vmax.f32 %v1798_v50, %v1799_v62  ;;  %v1815_v2 = vrot.slane %v3204_v3, 4  ;;  %v3232_v61 = vpop.f32.mrf.mxu1 }
  0xfd   : > { %v2049_v9 = vrot.slane %v3206_v5, 4  ;;  %v1812_v10 = vmax.f32 %v1810_v57, %v1811_v54  ;;  %v1804_v11 = vmax.f32 %v3199_v63, %v1803_v55  ;;  %vm1665_vm14 = vcmp.gt.f32.partialorder %v3213_v12, 0.0 }
  0xfe   : > { %v3215_v0 = vpop.eup %2749  ;;  %v2038_v13 = vadd.f32 %v3201_v43, %v2037_v6  ;;  %2759 = vpow2.f32 %v1987_v7  ;;  %v1801_v14 = vrot.slane %v1800_v8, 1  ;;  %v1816_v15 = vmax.f32 %v3204_v3, %v1815_v2 }
  0xff   : > { %v3219_v16 = vpop.eup %2751  ;;  %v2050_v4 = vadd.f32 %v3206_v5, %v2049_v9  ;;  %v2043_v17 = vrot.slane %v3215_v0, 4  ;;  %v1813_v19 = vrot.slane %v1812_v10, 1  ;;  %v1805_v21 = vrot.slane %v1804_v11, 2 }
 0x100   : > { %v2039_v23 = vrot.slane %v2038_v13, 2  ;;  %v2055_v24 = vrot.slane %v3219_v16, 4  ;;  %v1802_v25 = vmax.f32 %v1800_v8, %v1801_v14  ;;  %v1817_v26 = vrot.slane %v1816_v15, 2 }
 0x101   : > { %v2051_v29 = vrot.slane %v2050_v4, 2  ;;  %v2044_v31 = vadd.f32 %v3215_v0, %v2043_v17  ;;  %v1814_v32 = vmax.f32 %v1812_v10, %v1813_v19  ;;  %v1806_v33 = vmax.f32 %v1804_v11, %v1805_v21 }
 0x102   : > { %v2040_v34 = vadd.f32 %v2039_v23, %v2038_v13  ;;  %v2056_v20 = vadd.f32 %v3219_v16, %v2055_v24  ;;  %v1949_v36 = vsub.f32 %v3186_v35, %v1802_v25  ;;  %v1818_v42 = vmax.f32 %v1816_v15, %v1817_v26  ;;  %v3246_v15 = vpop.f32.mrf.mxu1 }
 0x103   : > { %v3228_v46 = vpop.eup %2753  ;;  %v2052_v47 = vadd.f32 %v2051_v29, %v2050_v4  ;;  %v2045_v49 = vrot.slane %v2044_v31, 2  ;;  %v1951_v30 = vsub.f32 %v3190_v44, %v1814_v32  ;;  %v1807_v50 = vrot.slane %v1806_v33, 1 }
 0x104   : > { %v2041_v51 = vrot.slane %v2040_v34, 1  ;;  %v2057_v56 = vrot.slane %v2056_v20, 2  ;;  %v2061_v57 = vrot.slane %v3228_v46, 4  ;;  %v1989_v58 = vmul.f32 1.442695, %v1949_v36  ;;  %v919_v36 = vpop.f32.mrf.mxu0 }
 0x105   : > { %v2053_v62 = vrot.slane %v2052_v47, 1  ;;  %v2046_v1 = vadd.f32 %v2045_v49, %v2044_v31  ;;  %v1993_v35 = vmul.f32 1.442695, %v1951_v30  ;;  %v1808_v54 = vmax.f32 %v1806_v33, %v1807_v50 }
 0x106   : > { %v3234_v55 = vpop.eup %2755  ;;  %v3236_v6 = vadd.f32 %v2041_v51, %v2040_v34  ;;  %v2058_v7 = vadd.f32 %v2057_v56, %v2056_v20  ;;  %v2062_v8 = vadd.f32 %v3228_v46, %v2061_v57  ;;  %2761 = vpow2.f32 %v1989_v58  ;;  %v994_v20 = vpop.f32.mrf.mxu1 }
 0x107   : > { %v3239_v44 = vadd.f32 %v2053_v62, %v2052_v47  ;;  %v2047_v2 = vrot.slane %v2046_v1, 1  ;;  %v2073_v9 = vrot.slane %v3234_v55, 4  ;;  %2763 = vpow2.f32 %v1993_v35 }
 0x108   : > { %v3242_v10 = vpop.eup %2757  ;;  %2765 = vrcp.f32 %v3236_v6  ;;  %v2059_v11 = vrot.slane %v2058_v7, 1  ;;  %v2063_v13 = vrot.slane %v2062_v8, 2  ;;  %v1950_v14 = vsub.f32 %v3199_v63, %v1808_v54 }
 0x109   : > { %2767 = vrcp.f32 %v3239_v44  ;;  %v3249_v4 = vadd.f32 %v2047_v2, %v2046_v1  ;;  %v2074_v17 = vadd.f32 %v3234_v55, %v2073_v9  ;;  %v2067_v19 = vrot.slane %v3242_v10, 4 }
 0x10a   : > { %v3253_v21 = vadd.f32 %v2059_v11, %v2058_v7  ;;  %v2064_v23 = vadd.f32 %v2063_v13, %v2062_v8  ;;  %v1991_v24 = vmul.f32 1.442695, %v1950_v14  ;;  %v1819_v25 = vrot.slane %v1818_v42, 1  ;;  %v996_v11 = vpop.f32.mrf.mxu1 }
 0x10b   : > { %v3255_v26 = vpop.eup %2759  ;;  %2769 = vrcp.f32 %v3249_v4  ;;  %v2075_v63 = vrot.slane %v2074_v17, 2  ;;  %v2068_v29 = vadd.f32 %v3242_v10, %v2067_v19  ;;  %v1697_v31 = vmul.f32 0.01, %v3213_v12 }
 0x10c   : > { %2771 = vrcp.f32 %v3253_v21  ;;  %v2065_v32 = vrot.slane %v2064_v23, 1  ;;  %v2079_v33 = vrot.slane %v3255_v26, 4  ;;  %v1820_v34 = vmax.f32 %v1818_v42, %v1819_v25 }
 0x10d   : > { %v2076_v47 = vadd.f32 %v2075_v63, %v2074_v17  ;;  %v2069_v49 = vrot.slane %v2068_v29, 2  ;;  %2773 = vpow2.f32 %v1991_v24  ;;  %v3265_v30 = vsel %vm1665_vm14, %v3213_v12, %v1697_v31 }
 0x10e   : > { %v3267_v50 = vadd.f32 %v2065_v32, %v2064_v23  ;;  %v2080_v51 = vadd.f32 %v3255_v26, %v2079_v33  ;;  %v1952_v56 = vsub.f32 %v3204_v3, %v1820_v34  ;;  %v1821_v57 = vrot.slane %v3265_v30, 4 }
 0x10f   : > { %v2077_v58 = vrot.slane %v2076_v47, 1  ;;  %v2070_v42 = vadd.f32 %v2069_v49, %v2068_v29  ;;  %v1635_v62 = vadd.f32 %v3111_v39, %v994_v20  ;;  %v1634_v1 = vadd.f32 %v3111_v39, %v919_v36 }
 0x110   : > { %2775 = vrcp.f32 %v3267_v50  ;;  %v2081_v35 = vrot.slane %v2080_v51, 2  ;;  %v1995_v54 = vmul.f32 1.442695, %v1952_v56  ;;  %v1822_v12 = vmax.f32 %v3265_v30, %v1821_v57 }
 0x111   : > { %v3276_v7 = vadd.f32 %v2077_v58, %v2076_v47  ;;  %v2071_v8 = vrot.slane %v2070_v42, 1  ;;  %vm1667_vm15 = vcmp.gt.f32.partialorder %v1635_v62, 0.0  ;;  %v1699_v2 = vmul.f32 0.01, %v1635_v62 }
 0x112   : > { %v2082_v3 = vadd.f32 %v2081_v35, %v2080_v51  ;;  %2777 = vpow2.f32 %v1995_v54  ;;  %v1823_v9 = vrot.slane %v1822_v12, 2  ;;  %vm1666_vm0 = vcmp.gt.f32.partialorder %v1634_v1, 0.0 }
 0x113   : > { %v3278_v13 = vpop.eup %2761  ;;  %2779 = vrcp.f32 %v3276_v7  ;;  %v3281_v14 = vadd.f32 %v2071_v8, %v2070_v42  ;;  %v3283_v17 = vsel %vm1667_vm15, %v1635_v62, %v1699_v2  ;;  %v1698_v19 = vmul.f32 0.01, %v1634_v1 }
 0x114   : > { %v3285_v23 = vpop.eup %2763  ;;  %v2083_v24 = vrot.slane %v2082_v3, 1  ;;  %v2085_v25 = vrot.slane %v3278_v13, 4  ;;  %v1824_v63 = vmax.f32 %v1822_v12, %v1823_v9  ;;  %v1833_v29 = vrot.slane %v3283_v17, 4 }
 0x115   : > { %v2766_v31 = vpop.eup %2765  ;;  %2781 = vrcp.f32 %v3281_v14  ;;  %v2097_v32 = vrot.slane %v3285_v23, 4  ;;  %v3291_v33 = vsel %vm1666_vm0, %v1634_v1, %v1698_v19  ;;  %v3294_v34 = vadd.f32 %v3111_v39, %v996_v11 }
 0x116   : > { %v2768_v20 = vpop.eup %2767  ;;  %v2261_v36 = vmul.f32 %v2766_v31, %v3236_v6  ;;  %v3297_v47 = vadd.f32 %v2083_v24, %v2082_v3  ;;  %v2086_v49 = vadd.f32 %v3278_v13, %v2085_v25  ;;  %v1825_v51 = vrot.slane %v1824_v63, 1 }
 0x117   : > { %v2263_v56 = vmul.f32 %v2768_v20, %v3239_v44  ;;  %v2098_v57 = vadd.f32 %v3285_v23, %v2097_v32  ;;  %v3303_v58 = vmax.f32 %v3283_v17, %v1833_v29  ;;  %v1827_v42 = vrot.slane %v3291_v33, 4 }
 0x118   : > { %v2770_v62 = vpop.eup %2769  ;;  %v2293_v1 = vsub.f32 2.0, %v2261_v36  ;;  %2783 = vrcp.f32 %v3297_v47  ;;  %v2087_v6 = vrot.slane %v2086_v49, 2  ;;  %v1826_v35 = vmax.f32 %v1824_v63, %v1825_v51 }
 0x119   : > { %v2772_v54 = vpop.eup %2771  ;;  %v2295_v12 = vsub.f32 2.0, %v2263_v56  ;;  %v2262_v8 = vmul.f32 %v2770_v62, %v3249_v4  ;;  %v2099_v2 = vrot.slane %v2098_v57, 2  ;;  %v1835_v44 = vrot.slane %v3303_v58, 2 }
 0x11a   : > { %v3310_v3 = vpop.eup %2773  ;;  %v2325_v9 = vmul.f32 %v2766_v31, %v2293_v1  ;;  %v2264_v11 = vmul.f32 %v2772_v54, %v3253_v21  ;;  %v2088_v19 = vadd.f32 %v2087_v6, %v2086_v49  ;;  %v1953_v24 = vsub.f32 %v3265_v30, %v1826_v35  ;;  %v3333_v35 = vpop.f32.mrf.mxu0 }
 0x11b   : > { %v2327_v25 = vmul.f32 %v2768_v20, %v2295_v12  ;;  %v2294_v63 = vsub.f32 2.0, %v2262_v8  ;;  %v2100_v4 = vadd.f32 %v2099_v2, %v2098_v57  ;;  %v2091_v29 = vrot.slane %v3310_v3, 4 }
 0x11c   : > { %v2357_v32 = vmul.f32 %v3201_v43, %v2325_v9  ;;  %v2296_v36 = vsub.f32 2.0, %v2264_v11  ;;  %v2089_v31 = vrot.slane %v2088_v19, 1  ;;  %v1997_v21 = vmul.f32 1.442695, %v1953_v24 }
 0x11d   : > { %v2776_v49 = vpop.eup %2775  ;;  %v2359_v30 = vmul.f32 %v3206_v5, %v2327_v25  ;;  %v2326_v51 = vmul.f32 %v2770_v62, %v2294_v63  ;;  %v2101_v20 = vrot.slane %v2100_v4, 1  ;;  %v2092_v56 = vadd.f32 %v3310_v3, %v2091_v29  ;;  %v3354_v63 = vpop.f32.mrf.mxu1 }
 0x11e   : > { %2389 = vst [vmem:[%s3317_s6] sm:$0xff] %v2357_v32  ;;  %v2421_v43 = vmul.f32 %v2357_v32, %v3107_v37  ;;  %v2328_v57 = vmul.f32 %v2772_v54, %v2296_v36  ;;  %v2265_v1 = vmul.f32 %v2776_v49, %v3267_v50  ;;  %v3331_v6 = vadd.f32 %v2089_v31, %v2088_v19 }
 0x11f   : > { %v3335_v12 = vpop.eup %2777  ;;  %2391 = vst [vmem:[%s3317_s6 + $0x10] sm:$0xff] %v2359_v30  ;;  %v2423_v5 = vmul.f32 %v2359_v30, %v3109_v38  ;;  %v2358_v62 = vmul.f32 %v3215_v0, %v2326_v51  ;;  %v3340_v8 = vadd.f32 %v2101_v20, %v2100_v4  ;;  %v2093_v37 = vrot.slane %v2092_v56, 2  ;;  %v3356_v4 = vpop.f32.mrf.mxu0 }
 0x120   : > { %v2780_v54 = vpop.eup %2779  ;;  %2453 = vst [vmem:[%s3324_s9] sm:$0xff] %v2421_v43  ;;  %v2360_v50 = vmul.f32 %v3219_v16, %v2328_v57  ;;  %v2297_v2 = vsub.f32 2.0, %v2265_v1  ;;  %2785 = vrcp.f32 %v3331_v6  ;;  %v2103_v9 = vrot.slane %v3335_v12, 4 }
 0x121   : > { %2455 = vst [vmem:[%s3324_s9 + $0x10] sm:$0xff] %v2423_v5  ;;  %2390 = vst [vmem:[%s3317_s6 + $0x8] sm:$0xff] %v2358_v62  ;;  %v2422_v38 = vmul.f32 %v2358_v62, %v3113_v40  ;;  %v2267_v0 = vmul.f32 %v2780_v54, %v3276_v7  ;;  %2787 = vrcp.f32 %v3340_v8  ;;  %v2094_v11 = vadd.f32 %v2093_v37, %v2092_v56  ;;  %v3372_v56 = vpop.f32.mrf.mxu1 }
 0x122   : > { %v2782_v19 = vpop.eup %2781  ;;  %2392 = vst [vmem:[%s3317_s6 + $0x18] sm:$0xff] %v2360_v50  ;;  %v2424_v16 = vmul.f32 %v2360_v50, %v3115_v41  ;;  %v2329_v24 = vmul.f32 %v2776_v49, %v2297_v2  ;;  %v2104_v25 = vadd.f32 %v3335_v12, %v2103_v9  ;;  %2789 = vpow2.f32 %v1997_v21 }
 0x123   : > { %2454 = vst [vmem:[%s3324_s9 + $0x8] sm:$0xff] %v2422_v38  ;;  %v2299_v40 = vsub.f32 2.0, %v2267_v0  ;;  %v2266_v7 = vmul.f32 %v2782_v19, %v3281_v14  ;;  %v2095_v29 = vrot.slane %v2094_v11, 1  ;;  %v1836_v32 = vmax.f32 %v3303_v58, %v1835_v44 }
 0x124   : > { %2456 = vst [vmem:[%s3324_s9 + $0x18] sm:$0xff] %v2424_v16  ;;  %v2361_v36 = vmul.f32 %v3228_v46, %v2329_v24  ;;  %v2105_v41 = vrot.slane %v2104_v25, 2  ;;  %v1828_v31 = vmax.f32 %v3291_v33, %v1827_v42  ;;  %vm1668_vm1 = vcmp.gt.f32.partialorder %v3294_v34, 0.0  ;;  %v1071_v42 = vpop.f32.mrf.mxu0 }
 0x125   : > { %v2784_v21 = vpop.eup %2783  ;;  %v2331_v49 = vmul.f32 %v2780_v54, %v2299_v40  ;;  %v2298_v30 = vsub.f32 2.0, %v2266_v7  ;;  %v3367_v51 = vadd.f32 %v2095_v29, %v2094_v11  ;;  %v1837_v14 = vrot.slane %v1836_v32, 1  ;;  %v1148_v11 = vpop.f32.mrf.mxu1 }
 0x126   : > { %2393 = vst [vmem:[%s3317_s6 + $0x20] sm:$0xff] %v2361_v36  ;;  %v2425_v58 = vmul.f32 %v2361_v36, %v3121_v52  ;;  %v2268_v46 = vmul.f32 %v2784_v21, %v3297_v47  ;;  %v2106_v44 = vadd.f32 %v2105_v41, %v2104_v25  ;;  %v1829_v20 = vrot.slane %v1828_v31, 2 }
 0x127   : > { %v2363_v43 = vmul.f32 %v3234_v55, %v2331_v49  ;;  %v2330_v57 = vmul.f32 %v2782_v19, %v2298_v30  ;;  %2791 = vrcp.f32 %v3367_v51  ;;  %v1838_v1 = vmax.f32 %v1836_v32, %v1837_v14  ;;  %v1073_v19 = vpop.f32.mrf.mxu0 }
 0x128   : > { %2457 = vst [vmem:[%s3324_s9 + $0x20] sm:$0xff] %v2425_v58  ;;  %v2300_v5 = vsub.f32 2.0, %v2268_v46  ;;  %v2107_v62 = vrot.slane %v2106_v44, 1  ;;  %v1830_v37 = vmax.f32 %v1828_v31, %v1829_v20  ;;  %v1700_v52 = vmul.f32 0.01, %v3294_v34 }
 0x129   : > { %2395 = vst [vmem:[%s3317_s6 + $0x30] sm:$0xff] %v2363_v43  ;;  %v2427_v47 = vmul.f32 %v2363_v43, %v3123_v53  ;;  %v2362_v54 = vmul.f32 %v3242_v10, %v2330_v57  ;;  %v1955_v50 = vsub.f32 %v3283_v17, %v1838_v1  ;;  %v1637_v55 = vadd.f32 %v3111_v39, %v1071_v42 }
 0x12a   : > { %v2332_v2 = vmul.f32 %v2784_v21, %v2300_v5  ;;  %v3383_v9 = vadd.f32 %v2107_v62, %v2106_v44  ;;  %v1831_v38 = vrot.slane %v1830_v37, 1  ;;  %v3388_v0 = vsel %vm1668_vm1, %v3294_v34, %v1700_v52 }
 0x12b   : > { %2459 = vst [vmem:[%s3324_s9 + $0x30] sm:$0xff] %v2427_v47  ;;  %2394 = vst [vmem:[%s3317_s6 + $0x28] sm:$0xff] %v2362_v54  ;;  %v2426_v53 = vmul.f32 %v2362_v54, %v3131_v59  ;;  %v2001_v10 = vmul.f32 1.442695, %v1955_v50  ;;  %v1839_v17 = vrot.slane %v3388_v0, 4  ;;  %vm1669_vm2 = vcmp.gt.f32.partialorder %v1637_v55, 0.0 }
 0x12c   : > { %v2364_v16 = vmul.f32 %v3255_v26, %v2332_v2  ;;  %2793 = vrcp.f32 %v3383_v9  ;;  %v1832_v24 = vmax.f32 %v1830_v37, %v1831_v38  ;;  %v1701_v25 = vmul.f32 0.01, %v1637_v55 }
 0x12d   : > { %v2786_v40 = vpop.eup %2785  ;;  %2458 = vst [vmem:[%s3324_s9 + $0x28] sm:$0xff] %v2426_v53  ;;  %2795 = vpow2.f32 %v2001_v10  ;;  %v1840_v34 = vmax.f32 %v3388_v0, %v1839_v17  ;;  %v1639_v7 = vadd.f32 %v3111_v39, %v1148_v11  ;;  %v1638_v59 = vadd.f32 %v3111_v39, %v1073_v19 }
 0x12e   : > { %v2788_v29 = vpop.eup %2787  ;;  %2396 = vst [vmem:[%s3317_s6 + $0x38] sm:$0xff] %v2364_v16  ;;  %v2428_v32 = vmul.f32 %v2364_v16, %v3133_v60  ;;  %v2269_v26 = vmul.f32 %v2786_v40, %v3331_v6  ;;  %v1954_v36 = vsub.f32 %v3291_v33, %v1832_v24  ;;  %v3405_v41 = vsel %vm1669_vm2, %v1637_v55, %v1701_v25  ;;  %v1150_v6 = vpop.f32.mrf.mxu1 }
 0x12f   : > { %v3407_v31 = vpop.eup %2789  ;;  %v2271_v21 = vmul.f32 %v2788_v29, %v3340_v8  ;;  %v1841_v49 = vrot.slane %v1840_v34, 2  ;;  %v1845_v30 = vrot.slane %v3405_v41, 4  ;;  %vm1671_vm3 = vcmp.gt.f32.partialorder %v1639_v7, 0.0  ;;  %v3420_v55 = vpop.f32.mrf.mxu0 }
 0x130   : > { %2460 = vst [vmem:[%s3324_s9 + $0x38] sm:$0xff] %v2428_v32  ;;  %v2301_v14 = vsub.f32 2.0, %v2269_v26  ;;  %v2109_v58 = vrot.slane %v3407_v31, 4  ;;  %v1999_v60 = vmul.f32 1.442695, %v1954_v36  ;;  %vm1670_vm4 = vcmp.gt.f32.partialorder %v1638_v59, 0.0  ;;  %v3422_v2 = vpop.f32.mrf.mxu1 }
 0x131   : > { %v1703_v46 = vmul.f32 0.01, %v1639_v7  ;;  %v2303_v44 = vsub.f32 2.0, %v2271_v21  ;;  %v1842_v33 = vmax.f32 %v1840_v34, %v1841_v49  ;;  %v1846_v20 = vmax.f32 %v3405_v41, %v1845_v30 }
 0x132   : > { %v2333_v42 = vmul.f32 %v2786_v40, %v2301_v14  ;;  %v2110_v43 = vadd.f32 %v3407_v31, %v2109_v58  ;;  %2797 = vpow2.f32 %v1999_v60  ;;  %v1702_v54 = vmul.f32 0.01, %v1638_v59 }
 0x133   : > { %v3415_v8 = vsel %vm1671_vm3, %v1639_v7, %v1703_v46  ;;  %v2335_v57 = vmul.f32 %v2788_v29, %v2303_v44  ;;  %v1843_v1 = vrot.slane %v1842_v33, 1  ;;  %v1847_v5 = vrot.slane %v1846_v20, 2  ;;  %v3439_v29 = vpop.f32.mrf.mxu1 }
 0x134   : > { %v1857_v62 = vrot.slane %v3415_v8, 4  ;;  %v2792_v37 = vpop.eup %2791  ;;  %v2365_v52 = vmul.f32 %v3278_v13, %v2333_v42  ;;  %v2111_v47 = vrot.slane %v2110_v43, 2  ;;  %v1640_v50 = vadd.f32 %v3111_v39, %v1150_v6 }
 0x135   : > { %v2367_v38 = vmul.f32 %v3285_v23, %v2335_v57  ;;  %v2270_v11 = vmul.f32 %v2792_v37, %v3367_v51  ;;  %v1844_v19 = vmax.f32 %v1842_v33, %v1843_v1  ;;  %v1848_v53 = vmax.f32 %v1846_v20, %v1847_v5 }
 0x136   : > { %2397 = vst [vmem:[%s3317_s6 + $0x40] sm:$0xff] %v2365_v52  ;;  %v2429_v10 = vmul.f32 %v2365_v52, %v3147_v18  ;;  %v2112_v17 = vadd.f32 %v2111_v47, %v2110_v43  ;;  %v1858_v13 = vmax.f32 %v3415_v8, %v1857_v62  ;;  %v3430_v16 = vsel %vm1670_vm4, %v1638_v59, %v1702_v54  ;;  %v3437_v18 = vpop.f32.mrf.mxu0 }
 0x137   : > { %2399 = vst [vmem:[%s3317_s6 + $0x50] sm:$0xff] %v2367_v38  ;;  %v2431_v24 = vmul.f32 %v2367_v38, %v3154_v27  ;;  %v2302_v25 = vsub.f32 2.0, %v2270_v11  ;;  %v1956_v23 = vsub.f32 %v3388_v0, %v1844_v19  ;;  %v1849_v40 = vrot.slane %v1848_v53, 1 }
 0x138   : > { %2461 = vst [vmem:[%s3324_s9 + $0x40] sm:$0xff] %v2429_v10  ;;  %v2113_v51 = vrot.slane %v2112_v17, 1  ;;  %v1859_v34 = vrot.slane %v1858_v13, 2  ;;  %v1851_v7 = vrot.slane %v3430_v16, 4  ;;  %vm1672_vm5 = vcmp.gt.f32.partialorder %v1640_v50, 0.0  ;;  %v1225_v20 = vpop.f32.mrf.mxu0 }
 0x139   : > { %v2794_v32 = vpop.eup %2793  ;;  %2463 = vst [vmem:[%s3324_s9 + $0x50] sm:$0xff] %v2431_v24  ;;  %v2334_v59 = vmul.f32 %v2792_v37, %v2302_v25  ;;  %v2003_v26 = vmul.f32 1.442695, %v1956_v23  ;;  %v1850_v36 = vmax.f32 %v1848_v53, %v1849_v40  ;;  %v1704_v27 = vmul.f32 0.01, %v1640_v50 }
 0x13a   : > { %v3442_v21 = vpop.eup %2795  ;;  %v2272_v0 = vmul.f32 %v2794_v32, %v3383_v9  ;;  %v3445_v49 = vadd.f32 %v2113_v51, %v2112_v17  ;;  %v1860_v30 = vmax.f32 %v1858_v13, %v1859_v34  ;;  %v1852_v14 = vmax.f32 %v3430_v16, %v1851_v7  ;;  %v1302_v9 = vpop.f32.mrf.mxu1 }
 0x13b   : > { %v2366_v58 = vmul.f32 %v3310_v3, %v2334_v59  ;;  %v2121_v60 = vrot.slane %v3442_v21, 4  ;;  %2799 = vpow2.f32 %v2003_v26  ;;  %v1957_v46 = vsub.f32 %v3405_v41, %v1850_v36  ;;  %v1227_v23 = vpop.f32.mrf.mxu0 }
 0x13c   : > { %v2304_v6 = vsub.f32 2.0, %v2272_v0  ;;  %2801 = vrcp.f32 %v3445_v49  ;;  %v1861_v44 = vrot.slane %v1860_v30, 1  ;;  %v1853_v33 = vrot.slane %v1852_v14, 2 }
 0x13d   : > { %2398 = vst [vmem:[%s3317_s6 + $0x48] sm:$0xff] %v2366_v58  ;;  %v2430_v42 = vmul.f32 %v2366_v58, %v3156_v28  ;;  %v2122_v43 = vadd.f32 %v3442_v21, %v2121_v60  ;;  %v2005_v57 = vmul.f32 1.442695, %v1957_v46  ;;  %v3456_v3 = vsel %vm1672_vm5, %v1640_v50, %v1704_v27  ;;  %v3481_v58 = vpop.f32.mrf.mxu0 }
 0x13e   : > { %v2336_v1 = vmul.f32 %v2794_v32, %v2304_v6  ;;  %v1862_v5 = vmax.f32 %v1860_v30, %v1861_v44  ;;  %v1854_v41 = vmax.f32 %v1852_v14, %v1853_v33  ;;  %v1863_v62 = vrot.slane %v3456_v3, 4 }
 0x13f   : > { %v3459_v37 = vpop.eup %2797  ;;  %2462 = vst [vmem:[%s3324_s9 + $0x48] sm:$0xff] %v2430_v42  ;;  %v2123_v52 = vrot.slane %v2122_v43, 2  ;;  %2803 = vpow2.f32 %v2005_v57  ;;  %v1641_v47 = vadd.f32 %v3111_v39, %v1225_v20  ;;  %v1643_v28 = vadd.f32 %v3111_v39, %v1302_v9 }
 0x140   : > { %v2368_v54 = vmul.f32 %v3335_v12, %v2336_v1  ;;  %v2115_v50 = vrot.slane %v3459_v37, 4  ;;  %v1959_v38 = vsub.f32 %v3415_v8, %v1862_v5  ;;  %v1855_v11 = vrot.slane %v1854_v41, 1  ;;  %v1304_v8 = vpop.f32.mrf.mxu1 }
 0x141   : > { %v2124_v19 = vadd.f32 %v2123_v52, %v2122_v43  ;;  %v1864_v53 = vmax.f32 %v3456_v3, %v1863_v62  ;;  %vm1673_vm6 = vcmp.gt.f32.partialorder %v1641_v47, 0.0  ;;  %v1705_v10 = vmul.f32 0.01, %v1641_v47  ;;  %v3495_v62 = vpop.f32.mrf.mxu0 }
 0x142   : > { %2400 = vst [vmem:[%s3317_s6 + $0x58] sm:$0xff] %v2368_v54  ;;  %v2432_v17 = vmul.f32 %v2368_v54, %v3167_v48  ;;  %v2116_v13 = vadd.f32 %v3459_v37, %v2115_v50  ;;  %v2009_v24 = vmul.f32 1.442695, %v1959_v38  ;;  %v1856_v25 = vmax.f32 %v1854_v41, %v1855_v11 }
 0x143   : > { %v2125_v12 = vrot.slane %v2124_v19, 1  ;;  %v1865_v40 = vrot.slane %v1864_v53, 2  ;;  %v3471_v51 = vsel %vm1673_vm6, %v1641_v47, %v1705_v10  ;;  %vm1675_vm7 = vcmp.gt.f32.partialorder %v1643_v28, 0.0 }
 0x144   : > { %2464 = vst [vmem:[%s3324_s9 + $0x58] sm:$0xff] %v2432_v17  ;;  %v2117_v34 = vrot.slane %v2116_v13, 2  ;;  %2805 = vpow2.f32 %v2009_v24  ;;  %v1958_v7 = vsub.f32 %v3430_v16, %v1856_v25  ;;  %v1869_v32 = vrot.slane %v3471_v51, 4 }
 0x145   : > { %v3476_v59 = vadd.f32 %v2125_v12, %v2124_v19  ;;  %v1866_v48 = vmax.f32 %v1864_v53, %v1865_v40  ;;  %v1707_v26 = vmul.f32 0.01, %v1643_v28  ;;  %v1642_v36 = vadd.f32 %v3111_v39, %v1227_v23  ;;  %v1379_v23 = vpop.f32.mrf.mxu0 }
 0x146   : > { %v2118_v27 = vadd.f32 %v2117_v34, %v2116_v13  ;;  %v2007_v0 = vmul.f32 1.442695, %v1958_v7  ;;  %v1870_v30 = vmax.f32 %v3471_v51, %v1869_v32  ;;  %v1644_v14 = vadd.f32 %v3111_v39, %v1304_v8 }
 0x147   : > { %2807 = vrcp.f32 %v3476_v59  ;;  %v1867_v60 = vrot.slane %v1866_v48, 1  ;;  %v3485_v16 = vsel %vm1675_vm7, %v1643_v28, %v1707_v26  ;;  %vm1674_vm8 = vcmp.gt.f32.partialorder %v1642_v36, 0.0  ;;  %v3515_v26 = vpop.f32.mrf.mxu1 }
 0x148   : > { %v3487_v46 = vpop.eup %2799  ;;  %v2119_v6 = vrot.slane %v2118_v27, 1  ;;  %2809 = vpow2.f32 %v2007_v0  ;;  %v1871_v44 = vrot.slane %v1870_v30, 2  ;;  %v1881_v33 = vrot.slane %v3485_v16, 4 }
 0x149   : > { %v2802_v20 = vpop.eup %2801  ;;  %v2127_v9 = vrot.slane %v3487_v46, 4  ;;  %v1868_v42 = vmax.f32 %v1866_v48, %v1867_v60  ;;  %v1706_v43 = vmul.f32 0.01, %v1642_v36  ;;  %vm1676_vm9 = vcmp.gt.f32.partialorder %v1644_v14, 0.0 }
 0x14a   : > { %v2273_v57 = vmul.f32 %v2802_v20, %v3445_v49  ;;  %v3492_v1 = vadd.f32 %v2119_v6, %v2118_v27  ;;  %v1872_v5 = vmax.f32 %v1870_v30, %v1871_v44  ;;  %v1882_v41 = vmax.f32 %v3485_v16, %v1881_v33 }
 0x14b   : > { %v2128_v52 = vadd.f32 %v3487_v46, %v2127_v9  ;;  %v1960_v47 = vsub.f32 %v3456_v3, %v1868_v42  ;;  %v3500_v28 = vsel %vm1674_vm8, %v1642_v36, %v1706_v43  ;;  %v1708_v54 = vmul.f32 0.01, %v1644_v14 }
 0x14c   : > { %v3502_v50 = vpop.eup %2803  ;;  %v2305_v38 = vsub.f32 2.0, %v2273_v57  ;;  %2811 = vrcp.f32 %v3492_v1  ;;  %v1873_v49 = vrot.slane %v1872_v5, 1  ;;  %v1883_v11 = vrot.slane %v1882_v41, 2 }
 0x14d   : > { %v2129_v19 = vrot.slane %v2128_v52, 2  ;;  %v2133_v53 = vrot.slane %v3502_v50, 4  ;;  %v2011_v10 = vmul.f32 1.442695, %v1960_v47  ;;  %v1875_v17 = vrot.slane %v3500_v28, 4 }
 0x14e   : > { %v2337_v13 = vmul.f32 %v2802_v20, %v2305_v38  ;;  %v1874_v24 = vmax.f32 %v1872_v5, %v1873_v49  ;;  %v1884_v3 = vmax.f32 %v1882_v41, %v1883_v11  ;;  %v3508_v25 = vsel %vm1676_vm9, %v1644_v14, %v1708_v54  ;;  %v3529_v5 = vpop.f32.mrf.mxu1 }
 0x14f   : > { %v2130_v12 = vadd.f32 %v2129_v19, %v2128_v52  ;;  %v2134_v40 = vadd.f32 %v3502_v50, %v2133_v53  ;;  %2813 = vpow2.f32 %v2011_v10  ;;  %v1876_v8 = vmax.f32 %v3500_v28, %v1875_v17 }
 0x150   : > { %v2369_v34 = vmul.f32 %v3407_v31, %v2337_v13  ;;  %v1961_v7 = vsub.f32 %v3471_v51, %v1874_v24  ;;  %v1885_v32 = vrot.slane %v1884_v3, 1  ;;  %v1887_v48 = vrot.slane %v3508_v25, 4 }
 0x151   : > { %v3517_v36 = vpop.eup %2805  ;;  %v2131_v27 = vrot.slane %v2130_v12, 1  ;;  %v2135_v0 = vrot.slane %v2134_v40, 2  ;;  %v1877_v30 = vrot.slane %v1876_v8, 2  ;;  %v1645_v14 = vadd.f32 %v3111_v39, %v1379_v23 }
 0x152   : > { %2401 = vst [vmem:[%s3317_s6 + $0x60] sm:$0xff] %v2369_v34  ;;  %v2433_v60 = vmul.f32 %v2369_v34, %v3182_v22  ;;  %v2145_v31 = vrot.slane %v3517_v36, 4  ;;  %v2013_v6 = vmul.f32 1.442695, %v1961_v7  ;;  %v1886_v51 = vmax.f32 %v1884_v3, %v1885_v32 }
 0x153   : > { %v3523_v44 = vadd.f32 %v2131_v27, %v2130_v12  ;;  %v2136_v33 = vadd.f32 %v2135_v0, %v2134_v40  ;;  %v1878_v20 = vmax.f32 %v1876_v8, %v1877_v30  ;;  %v1888_v9 = vmax.f32 %v3508_v25, %v1887_v48 }
 0x154   : > { %v2808_v42 = vpop.eup %2807  ;;  %2465 = vst [vmem:[%s3324_s9 + $0x60] sm:$0xff] %v2433_v60  ;;  %v2146_v43 = vadd.f32 %v3517_v36, %v2145_v31  ;;  %2815 = vpow2.f32 %v2013_v6  ;;  %v1963_v57 = vsub.f32 %v3485_v16, %v1886_v51  ;;  %vm1677_vm10 = vcmp.gt.f32.partialorder %v1645_v14, 0.0 }
 0x155   : > { %v3531_v22 = vpop.eup %2809  ;;  %v2275_v41 = vmul.f32 %v2808_v42, %v3476_v59  ;;  %2817 = vrcp.f32 %v3523_v44  ;;  %v2137_v52 = vrot.slane %v2136_v33, 1  ;;  %v1879_v47 = vrot.slane %v1878_v20, 1  ;;  %v1456_v59 = vpop.f32.mrf.mxu1 }
 0x156   : > { %v2147_v54 = vrot.slane %v2146_v43, 2  ;;  %v2139_v38 = vrot.slane %v3531_v22, 4  ;;  %v2017_v49 = vmul.f32 1.442695, %v1963_v57  ;;  %v1889_v11 = vrot.slane %v1888_v9, 2 }
 0x157   : > { %v2307_v19 = vsub.f32 2.0, %v2275_v41  ;;  %v3536_v53 = vadd.f32 %v2137_v52, %v2136_v33  ;;  %v1880_v16 = vmax.f32 %v1878_v20, %v1879_v47  ;;  %v1709_v10 = vmul.f32 0.01, %v1645_v14  ;;  %v1381_v33 = vpop.f32.mrf.mxu0 }
 0x158   : > { %v2148_v17 = vadd.f32 %v2147_v54, %v2146_v43  ;;  %v2140_v13 = vadd.f32 %v3531_v22, %v2139_v38  ;;  %2819 = vpow2.f32 %v2017_v49  ;;  %v1890_v24 = vmax.f32 %v1888_v9, %v1889_v11  ;;  %v1458_v43 = vpop.f32.mrf.mxu1 }
 0x159   : > { %v2812_v3 = vpop.eup %2811  ;;  %v2339_v23 = vmul.f32 %v2808_v42, %v2307_v19  ;;  %2821 = vrcp.f32 %v3536_v53  ;;  %v1962_v12 = vsub.f32 %v3500_v28, %v1880_v16  ;;  %v3542_v40 = vsel %vm1677_vm10, %v1645_v14, %v1709_v10 }
 0x15a   : > { %v2274_v8 = vmul.f32 %v2812_v3, %v3492_v1  ;;  %v2149_v34 = vrot.slane %v2148_v17, 1  ;;  %v2141_v7 = vrot.slane %v2140_v13, 2  ;;  %v1891_v32 = vrot.slane %v1890_v24, 1 }
 0x15b   : > { %v2371_v48 = vmul.f32 %v3442_v21, %v2339_v23  ;;  %v2015_v27 = vmul.f32 1.442695, %v1962_v12  ;;  %v1893_v0 = vrot.slane %v3542_v40, 4  ;;  %v1647_v30 = vadd.f32 %v3111_v39, %v1456_v59 }
 0x15c   : > { %v3548_v60 = vpop.eup %2813  ;;  %v2306_v31 = vsub.f32 2.0, %v2274_v8  ;;  %v3550_v28 = vadd.f32 %v2149_v34, %v2148_v17  ;;  %v2142_v14 = vadd.f32 %v2141_v7, %v2140_v13  ;;  %v1892_v6 = vmax.f32 %v1890_v24, %v1891_v32 }
 0x15d   : > { %2403 = vst [vmem:[%s3317_s6 + $0x70] sm:$0xff] %v2371_v48  ;;  %v2435_v1 = vmul.f32 %v2371_v48, %v3232_v61  ;;  %v2151_v51 = vrot.slane %v3548_v60, 4  ;;  %2823 = vpow2.f32 %v2015_v27  ;;  %v1894_v21 = vmax.f32 %v3542_v40, %v1893_v0 }
 0x15e   : > { %v2338_v20 = vmul.f32 %v2812_v3, %v2306_v31  ;;  %2825 = vrcp.f32 %v3550_v28  ;;  %v2143_v9 = vrot.slane %v2142_v14, 1  ;;  %v1964_v42 = vsub.f32 %v3508_v25, %v1892_v6 }
 0x15f   : > { %2467 = vst [vmem:[%s3324_s9 + $0x70] sm:$0xff] %v2435_v1  ;;  %v2152_v57 = vadd.f32 %v3548_v60, %v2151_v51  ;;  %v1895_v41 = vrot.slane %v1894_v21, 2  ;;  %vm1679_vm11 = vcmp.gt.f32.partialorder %v1647_v30, 0.0  ;;  %v1711_v61 = vmul.f32 0.01, %v1647_v30  ;;  %v3590_v51 = vpop.f32.mrf.mxu0 }
 0x160   : > { %v2370_v52 = vmul.f32 %v3459_v37, %v2338_v20  ;;  %v3561_v47 = vadd.f32 %v2143_v9, %v2142_v14  ;;  %v2019_v54 = vmul.f32 1.442695, %v1964_v42  ;;  %v1646_v38 = vadd.f32 %v3111_v39, %v1381_v33 }
 0x161   : > { %v3564_v49 = vpop.eup %2815  ;;  %v2153_v11 = vrot.slane %v2152_v57, 2  ;;  %v1896_v25 = vmax.f32 %v1894_v21, %v1895_v41  ;;  %v3566_v19 = vsel %vm1679_vm11, %v1647_v30, %v1711_v61  ;;  %v3569_v16 = vadd.f32 %v3111_v39, %v1458_v43 }
 0x162   : > { %v2818_v10 = vpop.eup %2817  ;;  %2402 = vst [vmem:[%s3317_s6 + $0x68] sm:$0xff] %v2370_v52  ;;  %v2434_v17 = vmul.f32 %v2370_v52, %v3192_v45  ;;  %2827 = vrcp.f32 %v3561_v47  ;;  %v2157_v37 = vrot.slane %v3564_v49, 4  ;;  %v1905_v13 = vrot.slane %v3566_v19, 4 }
 0x163   : > { %v2276_v24 = vmul.f32 %v2818_v10, %v3523_v44  ;;  %v2154_v59 = vadd.f32 %v2153_v11, %v2152_v57  ;;  %2829 = vpow2.f32 %v2019_v54  ;;  %v1897_v3 = vrot.slane %v1896_v25, 1 }
 0x164   : > { %2466 = vst [vmem:[%s3324_s9 + $0x68] sm:$0xff] %v2434_v17  ;;  %v2158_v23 = vadd.f32 %v3564_v49, %v2157_v37  ;;  %v1906_v12 = vmax.f32 %v3566_v19, %v1905_v13  ;;  %vm1678_vm12 = vcmp.gt.f32.partialorder %v1646_v38, 0.0  ;;  %v1710_v8 = vmul.f32 0.01, %v1646_v38 }
 0x165   : > { %v3580_v34 = vpop.eup %2819  ;;  %v2308_v45 = vsub.f32 2.0, %v2276_v24  ;;  %v2155_v7 = vrot.slane %v2154_v59, 1  ;;  %v1898_v32 = vmax.f32 %v1896_v25, %v1897_v3  ;;  %vm1680_vm13 = vcmp.gt.f32.partialorder %v3569_v16, 0.0 }
 0x166   : > { %v2822_v48 = vpop.eup %2821  ;;  %v2159_v27 = vrot.slane %v2158_v23, 2  ;;  %v2169_v44 = vrot.slane %v3580_v34, 4  ;;  %v1907_v0 = vrot.slane %v1906_v12, 2  ;;  %v3584_v30 = vsel %vm1678_vm12, %v1646_v38, %v1710_v8 }
 0x167   : > { %v2340_v31 = vmul.f32 %v2818_v10, %v2308_v45  ;;  %v2277_v14 = vmul.f32 %v2822_v48, %v3536_v53  ;;  %v3587_v6 = vadd.f32 %v2155_v7, %v2154_v59  ;;  %v1965_v1 = vsub.f32 %v3542_v40, %v1898_v32  ;;  %v3604_v10 = vpop.f32.mrf.mxu0 }
 0x168   : > { %v2160_v21 = vadd.f32 %v2159_v27, %v2158_v23  ;;  %v2170_v33 = vadd.f32 %v3580_v34, %v2169_v44  ;;  %v1908_v20 = vmax.f32 %v1906_v12, %v1907_v0  ;;  %v1899_v9 = vrot.slane %v3584_v30, 4 }
 0x169   : > { %v2372_v42 = vmul.f32 %v3487_v46, %v2340_v31  ;;  %v2309_v43 = vsub.f32 2.0, %v2277_v14  ;;  %2831 = vrcp.f32 %v3587_v6  ;;  %v2021_v57 = vmul.f32 1.442695, %v1965_v1  ;;  %v3602_v46 = vpop.f32.mrf.mxu1  ;;  %v1533_v44 = vpop.f32.mrf.mxu0 }
 0x16a   : > { %v3596_v53 = vpop.eup %2823  ;;  %v2161_v41 = vrot.slane %v2160_v21, 1  ;;  %v2171_v40 = vrot.slane %v2170_v33, 2  ;;  %v1909_v61 = vrot.slane %v1908_v20, 1  ;;  %v1900_v52 = vmax.f32 %v3584_v30, %v1899_v9 }
 0x16b   : > { %v2826_v54 = vpop.eup %2825  ;;  %2404 = vst [vmem:[%s3317_s6 + $0x78] sm:$0xff] %v2372_v42  ;;  %v2436_v38 = vmul.f32 %v2372_v42, %v3246_v15  ;;  %v2341_v11 = vmul.f32 %v2822_v48, %v2309_v43  ;;  %v2163_v25 = vrot.slane %v3596_v53, 4  ;;  %2833 = vpow2.f32 %v2021_v57  ;;  %v3622_v27 = vpop.f32.mrf.mxu1 }
 0x16c   : > { %v2279_v17 = vmul.f32 %v2826_v54, %v3550_v28  ;;  %v3607_v37 = vadd.f32 %v2161_v41, %v2160_v21  ;;  %v2172_v13 = vadd.f32 %v2171_v40, %v2170_v33  ;;  %v1910_v24 = vmax.f32 %v1908_v20, %v1909_v61  ;;  %v1535_v40 = vpop.f32.mrf.mxu0 }
 0x16d   : > { %2468 = vst [vmem:[%s3324_s9 + $0x78] sm:$0xff] %v2436_v38  ;;  %v2373_v59 = vmul.f32 %v3502_v50, %v2341_v11  ;;  %v2164_v15 = vadd.f32 %v3596_v53, %v2163_v25  ;;  %v1901_v3 = vrot.slane %v1900_v52, 2  ;;  %v1712_v23 = vmul.f32 0.01, %v3569_v16  ;;  %v1610_v41 = vpop.f32.mrf.mxu1 }
 0x16e   : > { %v2311_v12 = vsub.f32 2.0, %v2279_v17  ;;  %2835 = vrcp.f32 %v3607_v37  ;;  %v2173_v8 = vrot.slane %v2172_v13, 1  ;;  %v1967_v45 = vsub.f32 %v3566_v19, %v1910_v24 }
 0x16f   : > { %v2828_v28 = vpop.eup %2827  ;;  %2405 = vst [vmem:[%s3317_s6 + $0x80] sm:$0xff] %v2373_v59  ;;  %v2437_v7 = vmul.f32 %v2373_v59, %v3333_v35  ;;  %v2165_v32 = vrot.slane %v2164_v15, 2  ;;  %v1902_v48 = vmax.f32 %v1900_v52, %v1901_v3  ;;  %v3620_v50 = vsel %vm1680_vm13, %v3569_v16, %v1712_v23 }
 0x170   : > { %v3624_v0 = vpop.eup %2829  ;;  %v2343_v31 = vmul.f32 %v2826_v54, %v2311_v12  ;;  %v2278_v14 = vmul.f32 %v2828_v28, %v3561_v47  ;;  %v3627_v19 = vadd.f32 %v2173_v8, %v2172_v13  ;;  %v2025_v1 = vmul.f32 1.442695, %v1967_v45 }
 0x171   : > { %2469 = vst [vmem:[%s3324_s9 + $0x80] sm:$0xff] %v2437_v7  ;;  %v2166_v35 = vadd.f32 %v2165_v32, %v2164_v15  ;;  %v2175_v21 = vrot.slane %v3624_v0, 4  ;;  %v1903_v33 = vrot.slane %v1902_v48, 1  ;;  %v1911_v16 = vrot.slane %v3620_v50, 4 }
 0x172   : > { %v2375_v20 = vmul.f32 %v3517_v36, %v2343_v31  ;;  %v2310_v9 = vsub.f32 2.0, %v2278_v14  ;;  %2837 = vrcp.f32 %v3627_v19  ;;  %v1649_v42 = vadd.f32 %v3111_v39, %v1533_v44 }
 0x173   : > { %v2167_v43 = vrot.slane %v2166_v35, 1  ;;  %v2176_v47 = vadd.f32 %v3624_v0, %v2175_v21  ;;  %2839 = vpow2.f32 %v2025_v1  ;;  %v1904_v57 = vmax.f32 %v1902_v48, %v1903_v33 }
 0x174   : > { %2407 = vst [vmem:[%s3317_s6 + $0x90] sm:$0xff] %v2375_v20  ;;  %v2439_v61 = vmul.f32 %v2375_v20, %v3354_v63  ;;  %v2342_v52 = vmul.f32 %v2828_v28, %v2310_v9  ;;  %v1912_v54 = vmax.f32 %v3620_v50, %v1911_v16  ;;  %vm1681_vm14 = vcmp.gt.f32.partialorder %v1649_v42, 0.0 }
 0x175   : > { %v3639_v36 = vadd.f32 %v2167_v43, %v2166_v35  ;;  %v2177_v38 = vrot.slane %v2176_v47, 2  ;;  %v1966_v11 = vsub.f32 %v3584_v30, %v1904_v57  ;;  %v1713_v25 = vmul.f32 0.01, %v1649_v42 }
 0x176   : > { %v2832_v17 = vpop.eup %2831  ;;  %2471 = vst [vmem:[%s3324_s9 + $0x90] sm:$0xff] %v2439_v61  ;;  %v2374_v13 = vmul.f32 %v3531_v22, %v2342_v52  ;;  %v1913_v24 = vrot.slane %v1912_v54, 2  ;;  %v1651_v59 = vadd.f32 %v3111_v39, %v1610_v41  ;;  %v1650_v63 = vadd.f32 %v3111_v39, %v1535_v40 }
 0x177   : > { %v2280_v15 = vmul.f32 %v2832_v17, %v3587_v6  ;;  %2841 = vrcp.f32 %v3639_v36  ;;  %v2178_v3 = vadd.f32 %v2177_v38, %v2176_v47  ;;  %v2023_v23 = vmul.f32 1.442695, %v1966_v11 }
 0x178   : > { %v3648_v12 = vpop.eup %2833  ;;  %2406 = vst [vmem:[%s3317_s6 + $0x88] sm:$0xff] %v2374_v13  ;;  %v2438_v30 = vmul.f32 %v2374_v13, %v3356_v4  ;;  %v1914_v8 = vmax.f32 %v1912_v54, %v1913_v24  ;;  %v3653_v22 = vsel %vm1681_vm14, %v1649_v42, %v1713_v25  ;;  %vm1683_vm15 = vcmp.gt.f32.partialorder %v1651_v59, 0.0 }
 0x179   : > { %v2312_v45 = vsub.f32 2.0, %v2280_v15  ;;  %v2179_v28 = vrot.slane %v2178_v3, 1  ;;  %v2181_v7 = vrot.slane %v3648_v12, 4  ;;  %2843 = vpow2.f32 %v2023_v23 }
 0x17a   : > { %2470 = vst [vmem:[%s3324_s9 + $0x88] sm:$0xff] %v2438_v30  ;;  %v1915_v6 = vrot.slane %v1914_v8, 1  ;;  %v1917_v32 = vrot.slane %v3653_v22, 4  ;;  %v1715_v48 = vmul.f32 0.01, %v1651_v59  ;;  %vm1682_vm0 = vcmp.gt.f32.partialorder %v1650_v63, 0.0 }
 0x17b   : > { %v2836_v44 = vpop.eup %2835  ;;  %v2344_v31 = vmul.f32 %v2832_v17, %v2312_v45  ;;  %v3658_v14 = vadd.f32 %v2179_v28, %v2178_v3  ;;  %v2182_v4 = vadd.f32 %v3648_v12, %v2181_v7  ;;  %v1714_v1 = vmul.f32 0.01, %v1650_v63 }
 0x17c   : > { %v2281_v35 = vmul.f32 %v2836_v44, %v3607_v37  ;;  %v1916_v21 = vmax.f32 %v1914_v8, %v1915_v6  ;;  %v1918_v33 = vmax.f32 %v3653_v22, %v1917_v32  ;;  %v3664_v16 = vsel %vm1683_vm15, %v1651_v59, %v1715_v48  ;;  %v1612_v59 = vpop.f32.mrf.mxu1 }
 0x17d   : > { %v2376_v20 = vmul.f32 %v3548_v60, %v2344_v31  ;;  %2845 = vrcp.f32 %v3658_v14  ;;  %v2183_v9 = vrot.slane %v2182_v4, 2  ;;  %v1929_v42 = vrot.slane %v3664_v16, 4 }
 0x17e   : > { %v2313_v43 = vsub.f32 2.0, %v2281_v35  ;;  %v1968_v47 = vsub.f32 %v3620_v50, %v1916_v21  ;;  %v1919_v57 = vrot.slane %v1918_v33, 2  ;;  %v3671_v37 = vsel %vm1682_vm0, %v1650_v63, %v1714_v1 }
 0x17f   : > { %v2838_v41 = vpop.eup %2837  ;;  %2408 = vst [vmem:[%s3317_s6 + $0x98] sm:$0xff] %v2376_v20  ;;  %v2440_v40 = vmul.f32 %v2376_v20, %v3372_v56  ;;  %v2184_v61 = vadd.f32 %v2183_v9, %v2182_v4  ;;  %v1930_v60 = vmax.f32 %v3664_v16, %v1929_v42  ;;  %v1923_v52 = vrot.slane %v3671_v37, 4 }
 0x180   : > { %v3677_v54 = vpop.eup %2839  ;;  %v2345_v38 = vmul.f32 %v2836_v44, %v2313_v43  ;;  %v2283_v11 = vmul.f32 %v2838_v41, %v3627_v19  ;;  %v2027_v25 = vmul.f32 1.442695, %v1968_v47  ;;  %v1920_v50 = vmax.f32 %v1918_v33, %v1919_v57 }
 0x181   : > { %2472 = vst [vmem:[%s3324_s9 + $0x98] sm:$0xff] %v2440_v40  ;;  %v2185_v17 = vrot.slane %v2184_v61, 1  ;;  %v2193_v13 = vrot.slane %v3677_v54, 4  ;;  %v1931_v24 = vrot.slane %v1930_v60, 2  ;;  %v1924_v56 = vmax.f32 %v3671_v37, %v1923_v52 }
 0x182   : > { %v2377_v63 = vmul.f32 %v3564_v49, %v2345_v38  ;;  %v2315_v15 = vsub.f32 2.0, %v2283_v11  ;;  %2847 = vpow2.f32 %v2027_v25  ;;  %v1921_v3 = vrot.slane %v1920_v50, 1 }
 0x183   : > { %v3684_v23 = vadd.f32 %v2185_v17, %v2184_v61  ;;  %v2194_v19 = vadd.f32 %v3677_v54, %v2193_v13  ;;  %v1932_v30 = vmax.f32 %v1930_v60, %v1931_v24  ;;  %v1925_v8 = vrot.slane %v1924_v56, 2 }
 0x184   : > { %v2842_v45 = vpop.eup %2841  ;;  %2409 = vst [vmem:[%s3317_s6 + $0xa0] sm:$0xff] %v2377_v63  ;;  %v2441_v28 = vmul.f32 %v2377_v63, %v3420_v55  ;;  %v2347_v7 = vmul.f32 %v2838_v41, %v2315_v15  ;;  %v1922_v6 = vmax.f32 %v1920_v50, %v1921_v3  ;;  %v1652_v32 = vadd.f32 %v3111_v39, %v1612_v59 }
 0x185   : > { %v2282_v49 = vmul.f32 %v2842_v45, %v3639_v36  ;;  %2849 = vrcp.f32 %v3684_v23  ;;  %v2195_v48 = vrot.slane %v2194_v19, 2  ;;  %v1933_v44 = vrot.slane %v1932_v30, 1 }
 0x186   : > { %v3692_v31 = vpop.eup %2843  ;;  %2473 = vst [vmem:[%s3324_s9 + $0xa0] sm:$0xff] %v2441_v28  ;;  %v2379_v4 = vmul.f32 %v3580_v34, %v2347_v7  ;;  %v1969_v1 = vsub.f32 %v3653_v22, %v1922_v6  ;;  %v1926_v35 = vmax.f32 %v1924_v56, %v1925_v8  ;;  %vm1684_vm1 = vcmp.gt.f32.partialorder %v1652_v32, 0.0 }
 0x187   : > { %v2314_v55 = vsub.f32 2.0, %v2282_v49  ;;  %v2196_v21 = vadd.f32 %v2195_v48, %v2194_v19  ;;  %v2187_v39 = vrot.slane %v3692_v31, 4  ;;  %v1934_v33 = vmax.f32 %v1932_v30, %v1933_v44 }
 0x188   : > { %2411 = vst [vmem:[%s3317_s6 + $0xb0] sm:$0xff] %v2379_v4  ;;  %v2443_v36 = vmul.f32 %v2379_v4, %v3422_v2  ;;  %v2029_v20 = vmul.f32 1.442695, %v1969_v1  ;;  %v1927_v9 = vrot.slane %v1926_v35, 1  ;;  %v1716_v42 = vmul.f32 0.01, %v1652_v32 }
 0x189   : > { %v2346_v43 = vmul.f32 %v2842_v45, %v2314_v55  ;;  %v2197_v47 = vrot.slane %v2196_v21, 1  ;;  %v2188_v34 = vadd.f32 %v3692_v31, %v2187_v39  ;;  %v1971_v22 = vsub.f32 %v3664_v16, %v1934_v33 }
 0x18a   : > { %v2846_v57 = vpop.eup %2845  ;;  %2475 = vst [vmem:[%s3324_s9 + $0xb0] sm:$0xff] %v2443_v36  ;;  %2851 = vpow2.f32 %v2029_v20  ;;  %v1928_v41 = vmax.f32 %v1926_v35, %v1927_v9  ;;  %v1748_v40 = vsel %vm1684_vm1, %v1652_v32, %v1716_v42 }
 0x18b   : > { %v2378_v61 = vmul.f32 %v3596_v53, %v2346_v43  ;;  %v2284_v2 = vmul.f32 %v2846_v57, %v3658_v14  ;;  %v2198_v60 = vadd.f32 %v2197_v47, %v2196_v21  ;;  %v2189_v52 = vrot.slane %v2188_v34, 2 }
 0x18c   : > { %v2033_v38 = vmul.f32 1.442695, %v1971_v22  ;;  %v1970_v11 = vsub.f32 %v3671_v37, %v1928_v41  ;;  %v1935_v25 = vrot.slane %v1748_v40, 4 }
 0x18d   : > { %2410 = vst [vmem:[%s3317_s6 + $0xa8] sm:$0xff] %v2378_v61  ;;  %v2442_v16 = vmul.f32 %v2378_v61, %v3437_v18  ;;  %v2316_v50 = vsub.f32 2.0, %v2284_v2  ;;  %2853 = vrcp.f32 %v2198_v60  ;;  %v2190_v17 = vadd.f32 %v2189_v52, %v2188_v34 }
 0x18e   : > { %2855 = vpow2.f32 %v2033_v38  ;;  %v2031_v13 = vmul.f32 1.442695, %v1970_v11  ;;  %v1936_v24 = vmax.f32 %v1748_v40, %v1935_v25 }
 0x18f   : > { %v3709_v53 = vpop.eup %2847  ;;  %2474 = vst [vmem:[%s3324_s9 + $0xa8] sm:$0xff] %v2442_v16  ;;  %v2348_v14 = vmul.f32 %v2846_v57, %v2316_v50  ;;  %v2191_v56 = vrot.slane %v2190_v17, 1 }
 0x190   : > { %v2199_v59 = vrot.slane %v3709_v53, 4  ;;  %2857 = vpow2.f32 %v2031_v13  ;;  %v1937_v37 = vrot.slane %v1936_v24, 2 }
 0x191   : > { %v2380_v63 = vmul.f32 %v3624_v0, %v2348_v14  ;;  %v2192_v18 = vadd.f32 %v2191_v56, %v2190_v17 }
 0x192   : > { %v2850_v15 = vpop.eup %2849  ;;  %v2200_v3 = vadd.f32 %v3709_v53, %v2199_v59  ;;  %v1938_v19 = vmax.f32 %v1936_v24, %v1937_v37 }
 0x193   : > { %2412 = vst [vmem:[%s3317_s6 + $0xb8] sm:$0xff] %v2380_v63  ;;  %v2444_v30 = vmul.f32 %v2380_v63, %v3439_v29  ;;  %v2285_v8 = vmul.f32 %v2850_v15, %v3684_v23  ;;  %2859 = vrcp.f32 %v2192_v18 }
 0x194   : > { %v2201_v45 = vrot.slane %v2200_v3, 2  ;;  %v1939_v28 = vrot.slane %v1938_v19, 1 }
 0x195   : > { %2476 = vst [vmem:[%s3324_s9 + $0xb8] sm:$0xff] %v2444_v30  ;;  %v2317_v7 = vsub.f32 2.0, %v2285_v8 }
 0x196   : > { %v2202_v6 = vadd.f32 %v2201_v45, %v2200_v3  ;;  %v1940_v32 = vmax.f32 %v1938_v19, %v1939_v28 }
 0x197   : > { %v3719_v49 = vpop.eup %2851  ;;  %v2349_v0 = vmul.f32 %v2850_v15, %v2317_v7 }
 0x198   : > { %v2203_v48 = vrot.slane %v2202_v6, 1  ;;  %v2205_v44 = vrot.slane %v3719_v49, 4  ;;  %v1972_v4 = vsub.f32 %v1748_v40, %v1940_v32 }
 0x199   : > { %v2381_v29 = vmul.f32 %v3648_v12, %v2349_v0 }
 0x19a   : > { %v2854_v1 = vpop.eup %2853  ;;  %v2204_v23 = vadd.f32 %v2203_v48, %v2202_v6  ;;  %v2206_v35 = vadd.f32 %v3719_v49, %v2205_v44  ;;  %v2035_v55 = vmul.f32 1.442695, %v1972_v4 }
 0x19b   : > { %v3724_v21 = vpop.eup %2855  ;;  %2413 = vst [vmem:[%s3317_s6 + $0xc0] sm:$0xff] %v2381_v29  ;;  %v2445_v39 = vmul.f32 %v2381_v29, %v3481_v58  ;;  %v2287_v33 = vmul.f32 %v2854_v1, %v2198_v60 }
 0x19c   : > { %2861 = vrcp.f32 %v2204_v23  ;;  %v2207_v36 = vrot.slane %v2206_v35, 2  ;;  %v2217_v20 = vrot.slane %v3724_v21, 4 }
 0x19d   : > { %v3729_v9 = vpop.eup %2857  ;;  %2477 = vst [vmem:[%s3324_s9 + $0xc0] sm:$0xff] %v2445_v39  ;;  %v2319_v12 = vsub.f32 2.0, %v2287_v33  ;;  %2863 = vpow2.f32 %v2035_v55 }
 0x19e   : > { %v2208_v42 = vadd.f32 %v2207_v36, %v2206_v35  ;;  %v2218_v43 = vadd.f32 %v3724_v21, %v2217_v20  ;;  %v2211_v47 = vrot.slane %v3729_v9, 4 }
 0x19f   : > { %v2351_v34 = vmul.f32 %v2854_v1, %v2319_v12 }
 0x1a0   : > { %v2860_v22 = vpop.eup %2859  ;;  %v2209_v58 = vrot.slane %v2208_v42, 1  ;;  %v2219_v57 = vrot.slane %v2218_v43, 2  ;;  %v2212_v41 = vadd.f32 %v3729_v9, %v2211_v47 }
 0x1a1   : > { %v2383_v40 = vmul.f32 %v3677_v54, %v2351_v34  ;;  %v2286_v61 = vmul.f32 %v2860_v22, %v2192_v18 }
 0x1a2   : > { %v2210_v2 = vadd.f32 %v2209_v58, %v2208_v42  ;;  %v2220_v60 = vadd.f32 %v2219_v57, %v2218_v43  ;;  %v2213_v52 = vrot.slane %v2212_v41, 2 }
 0x1a3   : > { %2415 = vst [vmem:[%s3317_s6 + $0xd0] sm:$0xff] %v2383_v40  ;;  %v2447_v38 = vmul.f32 %v2383_v40, %v3515_v26  ;;  %v2318_v11 = vsub.f32 2.0, %v2286_v61 }
 0x1a4   : > { %2865 = vrcp.f32 %v2210_v2  ;;  %v2221_v25 = vrot.slane %v2220_v60, 1  ;;  %v2214_v16 = vadd.f32 %v2213_v52, %v2212_v41 }
 0x1a5   : > { %2479 = vst [vmem:[%s3324_s9 + $0xd0] sm:$0xff] %v2447_v38  ;;  %v2350_v50 = vmul.f32 %v2860_v22, %v2318_v11 }
 0x1a6   : > { %v2222_v17 = vadd.f32 %v2221_v25, %v2220_v60  ;;  %v2215_v13 = vrot.slane %v2214_v16, 1 }
 0x1a7   : > { %v2382_v24 = vmul.f32 %v3692_v31, %v2350_v50 }
 0x1a8   : > { %2867 = vrcp.f32 %v2222_v17  ;;  %v2216_v54 = vadd.f32 %v2215_v13, %v2214_v16 }
 0x1a9   : > { %v2862_v14 = vpop.eup %2861  ;;  %2414 = vst [vmem:[%s3317_s6 + $0xc8] sm:$0xff] %v2382_v24  ;;  %v2446_v56 = vmul.f32 %v2382_v24, %v3495_v62 }
 0x1aa   : > { %v2864_v59 = vpop.eup %2863  ;;  %v2288_v26 = vmul.f32 %v2862_v14, %v2204_v23  ;;  %2869 = vrcp.f32 %v2216_v54 }
 0x1ab   : > { %2478 = vst [vmem:[%s3324_s9 + $0xc8] sm:$0xff] %v2446_v56  ;;  %v2223_v37 = vrot.slane %v2864_v59, 4 }
 0x1ac   : > { %v2320_v63 = vsub.f32 2.0, %v2288_v26 }
 0x1ad   : > { %v2224_v18 = vadd.f32 %v2864_v59, %v2223_v37 }
 0x1ae   : > { %v2352_v15 = vmul.f32 %v2862_v14, %v2320_v63 }
 0x1af   : > { %v2225_v3 = vrot.slane %v2224_v18, 2 }
 0x1b0   : > { %v2384_v19 = vmul.f32 %v3709_v53, %v2352_v15 }
 0x1b1   : > { %v2866_v31 = vpop.eup %2865  ;;  %v2226_v30 = vadd.f32 %v2225_v3, %v2224_v18 }
 0x1b2   : > { %2416 = vst [vmem:[%s3317_s6 + $0xd8] sm:$0xff] %v2384_v19  ;;  %v2448_v8 = vmul.f32 %v2384_v19, %v3529_v5  ;;  %v2289_v45 = vmul.f32 %v2866_v31, %v2210_v2 }
 0x1b3   : > { %v2227_v62 = vrot.slane %v2226_v30, 1 }
 0x1b4   : > { %2480 = vst [vmem:[%s3324_s9 + $0xd8] sm:$0xff] %v2448_v8  ;;  %v2321_v28 = vsub.f32 2.0, %v2289_v45 }
 0x1b5   : > { %v2868_v7 = vpop.eup %2867  ;;  %v2228_v6 = vadd.f32 %v2227_v62, %v2226_v30 }
 0x1b6   : > { %v2353_v32 = vmul.f32 %v2866_v31, %v2321_v28  ;;  %v2291_v0 = vmul.f32 %v2868_v7, %v2222_v17 }
 0x1b7   : > { %v2870_v48 = vpop.eup %2869  ;;  %2871 = vrcp.f32 %v2228_v6 }
 0x1b8   : > { %v2385_v53 = vmul.f32 %v3719_v49, %v2353_v32  ;;  %v2323_v44 = vsub.f32 2.0, %v2291_v0  ;;  %v2290_v4 = vmul.f32 %v2870_v48, %v2216_v54 }
 0x1ba   : > { %2417 = vst [vmem:[%s3317_s6 + $0xe0] sm:$0xff] %v2385_v53  ;;  %v2449_v5 = vmul.f32 %v2385_v53, %v3590_v51  ;;  %v2355_v29 = vmul.f32 %v2868_v7, %v2323_v44  ;;  %v2322_v1 = vsub.f32 2.0, %v2290_v4 }
 0x1bc   : > { %2481 = vst [vmem:[%s3324_s9 + $0xe0] sm:$0xff] %v2449_v5  ;;  %v2387_v23 = vmul.f32 %v3724_v21, %v2355_v29  ;;  %v2354_v35 = vmul.f32 %v2870_v48, %v2322_v1 }
 0x1be   : > { %2419 = vst [vmem:[%s3317_s6 + $0xf0] sm:$0xff] %v2387_v23  ;;  %v2451_v55 = vmul.f32 %v2387_v23, %v3602_v46  ;;  %v2386_v39 = vmul.f32 %v3729_v9, %v2354_v35 }
 0x1c0   : > { %2483 = vst [vmem:[%s3324_s9 + $0xf0] sm:$0xff] %v2451_v55  ;;  %2418 = vst [vmem:[%s3317_s6 + $0xe8] sm:$0xff] %v2386_v39  ;;  %v2450_v49 = vmul.f32 %v2386_v39, %v3604_v10 }
 0x1c2   : > { %2482 = vst [vmem:[%s3324_s9 + $0xe8] sm:$0xff] %v2450_v49 }
 0x1c4   : > { %v2872_v33 = vpop.eup %2871 }
 0x1c5   : > { %v2292_v51 = vmul.f32 %v2872_v33, %v2228_v6 }
 0x1c7   : > { %v2324_v36 = vsub.f32 2.0, %v2292_v51 }
 0x1c9   : > { %v2356_v20 = vmul.f32 %v2872_v33, %v2324_v36 }
 0x1cb   : > { %v2388_v12 = vmul.f32 %v2864_v59, %v2356_v20 }
 0x1cd   : > { %2420 = vst [vmem:[%s3317_s6 + $0xf8] sm:$0xff] %v2388_v12  ;;  %v2452_v21 = vmul.f32 %v2388_v12, %v3622_v27 }
 0x1cf   : > { %2484 = vst [vmem:[%s3324_s9 + $0xf8] sm:$0xff] %v2452_v21 }
 0x1d0 PF: > { %s15_s17 = sadd.s32 1, %s2895_s17   ;;  %s3776_s15 = smov %s2891_s16 }
 0x1d1   : > { %p12_p5 = scmp.ge.s32.totalorder %s15_s17, 4   ;;  %s3777_s16 = smov %s3779_s18 }
 0x1d3   :  { %14 = sbr.rel (!%p12_p5) target bundleno = 2 (0x2), region = 74 }

</bundles_post_ra>
